<compile_context>
chip_gen: v5e
topology: v5e:2x2
jax: 0.10.0
libtpu: 0.0.40
codegen_flags: <defaults>
</compile_context>

<pallas_src>
import functools

import jax
import jax.numpy as jnp
from jax import lax
from jax.experimental import pallas as pl
from jax.experimental.pallas import tpu as pltpu


# ---------------------------------------------------------------------------
# Kernel 1: fused MLP  relu(l3(relu(l2(relu(l1(x))))))  in a single pallas_call.
# ---------------------------------------------------------------------------
def _mlp_kernel(x_ref, w1_ref, b1_ref, w2_ref, b2_ref, w3_ref, b3_ref, o_ref):
    h = jnp.dot(x_ref[...], w1_ref[...], preferred_element_type=jnp.float32)
    h = jnp.maximum(h + b1_ref[...], 0.0)
    h = jnp.dot(h, w2_ref[...], preferred_element_type=jnp.float32)
    h = jnp.maximum(h + b2_ref[...], 0.0)
    h = jnp.dot(h, w3_ref[...], preferred_element_type=jnp.float32)
    h = jnp.maximum(h + b3_ref[...], 0.0)
    o_ref[...] = h.astype(o_ref.dtype)


def mlp_fused(x, w1, b1, w2, b2, w3, b3):
    B = x.shape[0]
    N3 = w3.shape[1]

    def full(a):
        return pl.BlockSpec(a.shape, lambda i: (0, 0))

    return pl.pallas_call(
        _mlp_kernel,
        grid=(1,),
        in_specs=[full(x), full(w1), full(b1), full(w2), full(b2), full(w3), full(b3)],
        out_specs=pl.BlockSpec((B, N3), lambda i: (0, 0)),
        out_shape=jax.ShapeDtypeStruct((B, N3), jnp.bfloat16),
        compiler_params=pltpu.CompilerParams(dimension_semantics=("arbitrary",)),
    )(x, w1, b1, w2, b2, w3, b3)


# ---------------------------------------------------------------------------
# Kernel 2: M-tiled matmul (bf16 in, f32 accumulate).  Used for the sub-pixel
# contribution matmul of every conv-transpose layer (N = 16*Cout, lane dense).
# ---------------------------------------------------------------------------
def _matmul_kernel(x_ref, w_ref, o_ref):
    o_ref[...] = jnp.dot(
        x_ref[...], w_ref[...], preferred_element_type=jnp.float32
    ).astype(o_ref.dtype)


def matmul_tiled(x, w, out_dtype=jnp.bfloat16, tm=256):
    M, K = x.shape
    K2, N = w.shape
    assert K == K2, (K, K2)
    if M <= tm or M % tm != 0:
        tm = M
    return pl.pallas_call(
        _matmul_kernel,
        grid=(M // tm,),
        in_specs=[
            pl.BlockSpec((tm, K), lambda i: (i, 0)),
            pl.BlockSpec((K, N), lambda i: (0, 0)),
        ],
        out_specs=pl.BlockSpec((tm, N), lambda i: (i, 0)),
        out_shape=jax.ShapeDtypeStruct((M, N), out_dtype),
        compiler_params=pltpu.CompilerParams(dimension_semantics=("parallel",)),
    )(x, w)


# ---------------------------------------------------------------------------
# Kernel 3: fused epilogue of convt3 + final 1x1 ConvTranspose2d:
#           o = relu(y + b_convt3) @ Wc   (bias-free 1x1 conv == pointwise matmul)
# ---------------------------------------------------------------------------
def _bias_relu_conv1x1_kernel(y_ref, b_ref, wc_ref, o_ref):
    h = jnp.maximum(y_ref[...] + b_ref[...], 0.0)
    o_ref[...] = jnp.dot(
        h, wc_ref[...], preferred_element_type=jnp.float32
    ).astype(o_ref.dtype)


def final_bias_relu_conv1x1(y, b, wc, tm=256):
    M, C = y.shape
    Cout = wc.shape[1]
    if M <= tm or M % tm != 0:
        tm = M
    return pl.pallas_call(
        _bias_relu_conv1x1_kernel,
        grid=(M // tm,),
        in_specs=[
            pl.BlockSpec((tm, C), lambda i: (i, 0)),
            pl.BlockSpec((1, C), lambda i: (0, 0)),
            pl.BlockSpec((C, Cout), lambda i: (0, 0)),
        ],
        out_specs=pl.BlockSpec((tm, Cout), lambda i: (i, 0)),
        out_shape=jax.ShapeDtypeStruct((M, Cout), jnp.float32),
        compiler_params=pltpu.CompilerParams(dimension_semantics=("parallel",)),
    )(y, b, wc)


# ---------------------------------------------------------------------------
# ConvTranspose2d(k=4, s=2, p=1) via sub-pixel decomposition:
#   contributions = x @ W'            (Pallas matmul, W' columns = (kh, kw, Cout))
#   output        = overlap-add of the 4 depth-to-space shift pieces (XLA glue,
#                   output-sized), then bias + ReLU.
# For output pixel o:  out[o] = sum_{dh} P[dh][o + 1 - 2*dh]  per spatial dim,
# where P[dh] is the depth-to-space of taps k = 2*dh + r (r = output phase).
# ---------------------------------------------------------------------------
def conv_transpose_4x4_s2_p1_subpixel(x_nhwc, w_mat, b, *, apply_bias_relu):
    N, H, W, Cin = x_nhwc.shape
    Cout = w_mat.shape[1] // 16
    contrib = matmul_tiled(x_nhwc.reshape(N * H * W, Cin), w_mat)  # (M, 16*Cout) bf16
    # axes: (n, p, q, dh, rh, dw, rw, c)
    t = contrib.reshape(N, H, W, 2, 2, 2, 2, Cout)
    t = jnp.transpose(t, (0, 3, 5, 1, 4, 2, 6, 7))
    t = t.reshape(N, 2, 2, 2 * H, 2 * W, Cout).astype(jnp.float32)
    y = (
        jnp.pad(t[:, 0, 0, 1:, 1:], ((0, 0), (0, 1), (0, 1), (0, 0)))
        + jnp.pad(t[:, 0, 1, 1:, :-1], ((0, 0), (0, 1), (1, 0), (0, 0)))
        + jnp.pad(t[:, 1, 0, :-1, 1:], ((0, 0), (1, 0), (0, 1), (0, 0)))
        + jnp.pad(t[:, 1, 1, :-1, :-1], ((0, 0), (1, 0), (1, 0), (0, 0)))
    )
    if apply_bias_relu:
        y = jnp.maximum(y + b.reshape(1, 1, 1, Cout), 0.0).astype(jnp.bfloat16)
    return y  # (N, 2H, 2W, Cout)


# ---------------------------------------------------------------------------
# Deterministic synthetic parameters (shapes follow Gn_model.__init__).
# TODO(synk): injL.iLinear_mod / injL.iLinear / injC.iConvTranspose2d are custom
# injective layers not provided; they are modeled here as standard affine /
# conv-transpose maps (iLinear_mod(d) taken as d -> 2d since l2 consumes 2*d).
# ---------------------------------------------------------------------------
def init_params(key, label_dim, n_ch):
    d = sum(label_dim)
    keys = jax.random.split(key, 8)

    def lin(k, fan_in, fan_out):
        kw, kb = jax.random.split(k)
        s = 1.0 / jnp.sqrt(fan_in)
        w = jax.random.uniform(kw, (fan_in, fan_out), jnp.float32, -s, s)
        bb = jax.random.uniform(kb, (fan_out,), jnp.float32, -s, s)
        return w, bb

    def convt(k, cin, cout, ksz):
        kw, kb = jax.random.split(k)
        s = 1.0 / jnp.sqrt(cin * ksz * ksz)
        w = jax.random.uniform(kw, (cin, cout, ksz, ksz), jnp.float32, -s, s)
        bb = jax.random.uniform(kb, (cout,), jnp.float32, -s, s)
        return w, bb

    return {
        "l1": lin(keys[0], d, 2 * d),
        "l2": lin(keys[1], 2 * d, n_ch * 8 * 4),
        "l3": lin(keys[2], n_ch * 8 * 4, n_ch * 8 * 4 * 4),
        "convt1": convt(keys[3], n_ch * 8, n_ch * 4, 4),
        "convt2": convt(keys[4], n_ch * 4, n_ch * 2, 4),
        "convt3": convt(keys[5], n_ch * 2, n_ch, 4),
        "conv": jax.random.uniform(keys[6], (n_ch, n_ch, 1, 1), jnp.float32, -1.0, 1.0)
        / n_ch,
    }


def prepare_params(raw, n_ch):
    """One-time weight preprocessing into kernel-friendly layouts/dtypes."""
    C = n_ch * 8
    (w1, b1), (w2, b2), (w3, b3) = raw["l1"], raw["l2"], raw["l3"]
    # Permute l3 columns from CHW-flat to HWC-flat so its output is already NHWC.
    perm = jnp.arange(C * 16).reshape(C, 4, 4).transpose(1, 2, 0).reshape(-1)

    def convt_mat(w):  # (Cin, Cout, 4, 4) -> (Cin, 16*Cout), columns = (kh, kw, Cout)
        cin, cout = w.shape[0], w.shape[1]
        return jnp.transpose(w, (0, 2, 3, 1)).reshape(cin, 16 * cout).astype(jnp.bfloat16)

    return {
        "w1": w1, "b1": b1.reshape(1, -1),
        "w2": w2, "b2": b2.reshape(1, -1),
        "w3": w3[:, perm], "b3": b3[perm].reshape(1, -1),
        "wc1": convt_mat(raw["convt1"][0]), "bc1": raw["convt1"][1],
        "wc2": convt_mat(raw["convt2"][0]), "bc2": raw["convt2"][1],
        "wc3": convt_mat(raw["convt3"][0]), "bc3": raw["convt3"][1].reshape(1, -1),
        "wconv": raw["conv"][:, :, 0, 0],  # (Cin, Cout) f32
    }


# ---------------------------------------------------------------------------
# Forward pass mirroring Gn_model.forward
# ---------------------------------------------------------------------------
def gn_forward(p, x, *, n_ch):
    B = x.shape[0]
    h = mlp_fused(x, p["w1"], p["b1"], p["w2"], p["b2"], p["w3"], p["b3"])
    out = h.reshape(B, 4, 4, n_ch * 8)  # already NHWC (l3 columns pre-permuted)
    out = conv_transpose_4x4_s2_p1_subpixel(out, p["wc1"], p["bc1"], apply_bias_relu=True)
    out = conv_transpose_4x4_s2_p1_subpixel(out, p["wc2"], p["bc2"], apply_bias_relu=True)
    y3 = conv_transpose_4x4_s2_p1_subpixel(out, p["wc3"], None, apply_bias_relu=False)
    o = final_bias_relu_conv1x1(y3.reshape(B * 32 * 32, n_ch), p["bc3"], p["wconv"])
    o = o.reshape(B, 32, 32, n_ch).transpose(0, 3, 1, 2)  # NCHW on the smallest tensor
    return o[:, :3], o[:, 3:]


# ---------------------------------------------------------------------------
# Pure-XLA f32 reference (dilated-conv formulation) for a sanity check.
# ---------------------------------------------------------------------------
def gn_reference(raw, x, *, n_ch):
    w1, b1 = raw["l1"]
    w2, b2 = raw["l2"]
    w3, b3 = raw["l3"]
    out = jnp.maximum(x @ w1 + b1, 0.0)
    out = jnp.maximum(out @ w2 + b2, 0.0)
    out = jnp.maximum(out @ w3 + b3, 0.0)
    B = x.shape[0]
    out = out.reshape(B, n_ch * 8, 4, 4)  # NCHW
    for name in ("convt1", "convt2", "convt3"):
        w, b = raw[name]
        rhs = jnp.transpose(w[:, :, ::-1, ::-1], (1, 0, 2, 3))  # OIHW, flipped
        out = lax.conv_general_dilated(
            out, rhs, window_strides=(1, 1), padding=((2, 2), (2, 2)),
            lhs_dilation=(2, 2), dimension_numbers=("NCHW", "OIHW", "NCHW"))
        out = jnp.maximum(out + b.reshape(1, -1, 1, 1), 0.0)
    wc = raw["conv"][:, :, 0, 0]
    out = jnp.einsum("nchw,cd->ndhw", out, wc)
    return out[:, :3], out[:, 3:]


if __name__ == "__main__":
    label_dim = (6, 4)   # sum = 10
    n_ch = 4             # must be >= 3 for the channel split
    batch = 2

    key = jax.random.PRNGKey(0)
    kx, kp = jax.random.split(key)
    x = jax.random.normal(kx, (batch, sum(label_dim)), dtype=jnp.float32)
    raw = init_params(kp, label_dim, n_ch)
    params = prepare_params(raw, n_ch)

    fwd = jax.jit(functools.partial(gn_forward, n_ch=n_ch))
    ret, n = fwd(params, x)
    jax.block_until_ready((ret, n))

    assert ret.shape == (batch, 3, 32, 32), ret.shape
    assert n.shape == (batch, n_ch - 3, 32, 32), n.shape
    assert bool(jnp.all(jnp.isfinite(ret))) and bool(jnp.all(jnp.isfinite(n)))

    # Loose sanity check vs f32 XLA reference (kernel path runs bf16 matmuls).
    ret_ref, n_ref = gn_reference(raw, x, n_ch=n_ch)
    scale = float(jnp.maximum(jnp.max(jnp.abs(ret_ref)), jnp.max(jnp.abs(n_ref)))) + 1e-6
    err = max(float(jnp.max(jnp.abs(ret - ret_ref))),
              float(jnp.max(jnp.abs(n - n_ref)))) / scale
    assert err < 0.2, f"mismatch vs reference: rel-to-max err {err}"

    print("KERNEL_OK")
</pallas_src>

<mosaic_0001>
module attributes {stable_mosaic.version = 11 : i64} {
  func.func @_mlp_kernel(%arg0: i32, %arg1: memref<2x10xf32, #tpu.memory_space<vmem>>, %arg2: memref<10x20xf32, #tpu.memory_space<vmem>>, %arg3: memref<1x20xf32, #tpu.memory_space<vmem>>, %arg4: memref<20x128xf32, #tpu.memory_space<vmem>>, %arg5: memref<1x128xf32, #tpu.memory_space<vmem>>, %arg6: memref<128x512xf32, #tpu.memory_space<vmem>>, %arg7: memref<1x512xf32, #tpu.memory_space<vmem>>, %arg8: memref<2x512xbf16, #tpu.memory_space<vmem>>) attributes {dimension_semantics = [#tpu.dimension_semantics<arbitrary>], iteration_bounds = array<i64: 1>, scalar_prefetch = 0 : i64, scratch_operands = 0 : i64, tpu.core_type = #tpu.core_type<tc>, window_params = [{pipeline_mode = #tpu.pipeline_mode<synchronous>, transform_indices = @transform_0, window_bounds = array<i64: 2, 10>}, {pipeline_mode = #tpu.pipeline_mode<synchronous>, transform_indices = @transform_1, window_bounds = array<i64: 10, 20>}, {pipeline_mode = #tpu.pipeline_mode<synchronous>, transform_indices = @transform_2, window_bounds = array<i64: 1, 20>}, {pipeline_mode = #tpu.pipeline_mode<synchronous>, transform_indices = @transform_3, window_bounds = array<i64: 20, 128>}, {pipeline_mode = #tpu.pipeline_mode<synchronous>, transform_indices = @transform_4, window_bounds = array<i64: 1, 128>}, {pipeline_mode = #tpu.pipeline_mode<synchronous>, transform_indices = @transform_5, window_bounds = array<i64: 128, 512>}, {pipeline_mode = #tpu.pipeline_mode<synchronous>, transform_indices = @transform_6, window_bounds = array<i64: 1, 512>}, {pipeline_mode = #tpu.pipeline_mode<synchronous>, transform_indices = @transform_7, window_bounds = array<i64: 2, 512>}]} {
    %c0 = arith.constant 0 : index
    %c0_0 = arith.constant 0 : index
    %0 = vector.load %arg1[%c0, %c0_0] : memref<2x10xf32, #tpu.memory_space<vmem>>, vector<2x10xf32>
    %c0_1 = arith.constant 0 : index
    %c0_2 = arith.constant 0 : index
    %1 = vector.load %arg2[%c0_1, %c0_2] : memref<10x20xf32, #tpu.memory_space<vmem>>, vector<10x20xf32>
    %cst = arith.constant dense<0.000000e+00> : vector<2x20xf32>
    %2 = tpu.matmul %0, %1, %cst {dimension_numbers = #tpu.dot_dimension_numbers<[1], [0], [0], [1], [0, 0, 1, 1], [], []>} : vector<2x10xf32>, vector<10x20xf32>, vector<2x20xf32> -> vector<2x20xf32>
    %c0_3 = arith.constant 0 : index
    %c0_4 = arith.constant 0 : index
    %3 = vector.load %arg3[%c0_3, %c0_4] : memref<1x20xf32, #tpu.memory_space<vmem>>, vector<1x20xf32>
    %4 = vector.broadcast %3 : vector<1x20xf32> to vector<2x20xf32>
    %5 = arith.addf %2, %4 : vector<2x20xf32>
    %cst_5 = arith.constant 0.000000e+00 : f32
    %6 = vector.broadcast %cst_5 : f32 to vector<2x20xf32>
    %7 = arith.maximumf %5, %6 : vector<2x20xf32>
    %c0_6 = arith.constant 0 : index
    %c0_7 = arith.constant 0 : index
    %8 = vector.load %arg4[%c0_6, %c0_7] : memref<20x128xf32, #tpu.memory_space<vmem>>, vector<20x128xf32>
    %cst_8 = arith.constant dense<0.000000e+00> : vector<2x128xf32>
    %9 = tpu.matmul %7, %8, %cst_8 {dimension_numbers = #tpu.dot_dimension_numbers<[1], [0], [0], [1], [0, 0, 1, 1], [], []>} : vector<2x20xf32>, vector<20x128xf32>, vector<2x128xf32> -> vector<2x128xf32>
    %c0_9 = arith.constant 0 : index
    %c0_10 = arith.constant 0 : index
    %10 = vector.load %arg5[%c0_9, %c0_10] : memref<1x128xf32, #tpu.memory_space<vmem>>, vector<1x128xf32>
    %11 = vector.broadcast %10 : vector<1x128xf32> to vector<2x128xf32>
    %12 = arith.addf %9, %11 : vector<2x128xf32>
    %cst_11 = arith.constant 0.000000e+00 : f32
    %13 = vector.broadcast %cst_11 : f32 to vector<2x128xf32>
    %14 = arith.maximumf %12, %13 : vector<2x128xf32>
    %c0_12 = arith.constant 0 : index
    %c0_13 = arith.constant 0 : index
    %15 = vector.load %arg6[%c0_12, %c0_13] : memref<128x512xf32, #tpu.memory_space<vmem>>, vector<128x512xf32>
    %cst_14 = arith.constant dense<0.000000e+00> : vector<2x512xf32>
    %16 = tpu.matmul %14, %15, %cst_14 {dimension_numbers = #tpu.dot_dimension_numbers<[1], [0], [0], [1], [0, 0, 1, 1], [], []>} : vector<2x128xf32>, vector<128x512xf32>, vector<2x512xf32> -> vector<2x512xf32>
    %c0_15 = arith.constant 0 : index
    %c0_16 = arith.constant 0 : index
    %17 = vector.load %arg7[%c0_15, %c0_16] : memref<1x512xf32, #tpu.memory_space<vmem>>, vector<1x512xf32>
    %18 = vector.broadcast %17 : vector<1x512xf32> to vector<2x512xf32>
    %19 = arith.addf %16, %18 : vector<2x512xf32>
    %cst_17 = arith.constant 0.000000e+00 : f32
    %20 = vector.broadcast %cst_17 : f32 to vector<2x512xf32>
    %21 = arith.maximumf %19, %20 : vector<2x512xf32>
    %22 = arith.truncf %21 : vector<2x512xf32> to vector<2x512xbf16>
    %c0_18 = arith.constant 0 : index
    %c0_19 = arith.constant 0 : index
    %23 = vector.load %arg8[%c0_18, %c0_19] : memref<2x512xbf16, #tpu.memory_space<vmem>>, vector<2x512xbf16>
    tpu.vector_store %arg8[%c0_18, %c0_19], %22 {strides = array<i32>} : memref<2x512xbf16, #tpu.memory_space<vmem>>, vector<2x512xbf16>,
    return
  }
  func.func @transform_0(%arg0: i32) -> (i32, i32) {
    %c0_i32 = arith.constant 0 : i32
    %c0_i32_0 = arith.constant 0 : i32
    %c0_i32_1 = arith.constant 0 : i32
    return %c0_i32, %c0_i32_0 : i32, i32
  }
  func.func @transform_1(%arg0: i32) -> (i32, i32) {
    %c0_i32 = arith.constant 0 : i32
    %c0_i32_0 = arith.constant 0 : i32
    %c0_i32_1 = arith.constant 0 : i32
    return %c0_i32, %c0_i32_0 : i32, i32
  }
  func.func @transform_2(%arg0: i32) -> (i32, i32) {
    %c0_i32 = arith.constant 0 : i32
    %c0_i32_0 = arith.constant 0 : i32
    %c0_i32_1 = arith.constant 0 : i32
    return %c0_i32, %c0_i32_0 : i32, i32
  }
  func.func @transform_3(%arg0: i32) -> (i32, i32) {
    %c0_i32 = arith.constant 0 : i32
    %c0_i32_0 = arith.constant 0 : i32
    %c0_i32_1 = arith.constant 0 : i32
    return %c0_i32, %c0_i32_0 : i32, i32
  }
  func.func @transform_4(%arg0: i32) -> (i32, i32) {
    %c0_i32 = arith.constant 0 : i32
    %c0_i32_0 = arith.constant 0 : i32
    %c0_i32_1 = arith.constant 0 : i32
    return %c0_i32, %c0_i32_0 : i32, i32
  }
  func.func @transform_5(%arg0: i32) -> (i32, i32) {
    %c0_i32 = arith.constant 0 : i32
    %c0_i32_0 = arith.constant 0 : i32
    %c0_i32_1 = arith.constant 0 : i32
    return %c0_i32, %c0_i32_0 : i32, i32
  }
  func.func @transform_6(%arg0: i32) -> (i32, i32) {
    %c0_i32 = arith.constant 0 : i32
    %c0_i32_0 = arith.constant 0 : i32
    %c0_i32_1 = arith.constant 0 : i32
    return %c0_i32, %c0_i32_0 : i32, i32
  }
  func.func @transform_7(%arg0: i32) -> (i32, i32) {
    %c0_i32 = arith.constant 0 : i32
    %c0_i32_0 = arith.constant 0 : i32
    %c0_i32_1 = arith.constant 0 : i32
    return %c0_i32, %c0_i32_0 : i32, i32
  }
}

module attributes {stable_mosaic.version = 11 : i64} {
  func.func @_matmul_kernel(%arg0: i32, %arg1: memref<32x32xbf16, #tpu.memory_space<vmem>>, %arg2: memref<32x256xbf16, #tpu.memory_space<vmem>>, %arg3: memref<32x256xbf16, #tpu.memory_space<vmem>>) attributes {dimension_semantics = [#tpu.dimension_semantics<parallel>], iteration_bounds = array<i64: 1>, scalar_prefetch = 0 : i64, scratch_operands = 0 : i64, tpu.core_type = #tpu.core_type<tc>, window_params = [{transform_indices = @transform_0, window_bounds = array<i64: 32, 32>}, {pipeline_mode = #tpu.pipeline_mode<synchronous>, transform_indices = @transform_1, window_bounds = array<i64: 32, 256>}, {transform_indices = @transform_2, window_bounds = array<i64: 32, 256>}]} {
    %c0 = arith.constant 0 : index
    %c0_0 = arith.constant 0 : index
    %0 = vector.load %arg1[%c0, %c0_0] : memref<32x32xbf16, #tpu.memory_space<vmem>>, vector<32x32xbf16>
    %c0_1 = arith.constant 0 : index
    %c0_2 = arith.constant 0 : index
    %1 = vector.load %arg2[%c0_1, %c0_2] : memref<32x256xbf16, #tpu.memory_space<vmem>>, vector<32x256xbf16>
    %cst = arith.constant dense<0.000000e+00> : vector<32x256xf32>
    %2 = tpu.matmul %0, %1, %cst {dimension_numbers = #tpu.dot_dimension_numbers<[1], [0], [0], [1], [0, 0, 1, 1], [], []>} : vector<32x32xbf16>, vector<32x256xbf16>, vector<32x256xf32> -> vector<32x256xf32>
    %3 = arith.truncf %2 : vector<32x256xf32> to vector<32x256xbf16>
    %c0_3 = arith.constant 0 : index
    %c0_4 = arith.constant 0 : index
    %4 = vector.load %arg3[%c0_3, %c0_4] : memref<32x256xbf16, #tpu.memory_space<vmem>>, vector<32x256xbf16>
    tpu.vector_store %arg3[%c0_3, %c0_4], %3 {strides = array<i32>} : memref<32x256xbf16, #tpu.memory_space<vmem>>, vector<32x256xbf16>,
    return
  }
  func.func @transform_0(%arg0: i32) -> (i32, i32) {
    %c0_i32 = arith.constant 0 : i32
    %c0_i32_0 = arith.constant 0 : i32
    return %arg0, %c0_i32 : i32, i32
  }
  func.func @transform_1(%arg0: i32) -> (i32, i32) {
    %c0_i32 = arith.constant 0 : i32
    %c0_i32_0 = arith.constant 0 : i32
    %c0_i32_1 = arith.constant 0 : i32
    return %c0_i32, %c0_i32_0 : i32, i32
  }
  func.func @transform_2(%arg0: i32) -> (i32, i32) {
    %c0_i32 = arith.constant 0 : i32
    %c0_i32_0 = arith.constant 0 : i32
    return %arg0, %c0_i32 : i32, i32
  }
}

module attributes {stable_mosaic.version = 11 : i64} {
  func.func @_matmul_kernel(%arg0: i32, %arg1: memref<128x16xbf16, #tpu.memory_space<vmem>>, %arg2: memref<16x128xbf16, #tpu.memory_space<vmem>>, %arg3: memref<128x128xbf16, #tpu.memory_space<vmem>>) attributes {dimension_semantics = [#tpu.dimension_semantics<parallel>], iteration_bounds = array<i64: 1>, scalar_prefetch = 0 : i64, scratch_operands = 0 : i64, tpu.core_type = #tpu.core_type<tc>, window_params = [{transform_indices = @transform_0, window_bounds = array<i64: 128, 16>}, {pipeline_mode = #tpu.pipeline_mode<synchronous>, transform_indices = @transform_1, window_bounds = array<i64: 16, 128>}, {transform_indices = @transform_2, window_bounds = array<i64: 128, 128>}]} {
    %c0 = arith.constant 0 : index
    %c0_0 = arith.constant 0 : index
    %0 = vector.load %arg1[%c0, %c0_0] : memref<128x16xbf16, #tpu.memory_space<vmem>>, vector<128x16xbf16>
    %c0_1 = arith.constant 0 : index
    %c0_2 = arith.constant 0 : index
    %1 = vector.load %arg2[%c0_1, %c0_2] : memref<16x128xbf16, #tpu.memory_space<vmem>>, vector<16x128xbf16>
    %cst = arith.constant dense<0.000000e+00> : vector<128x128xf32>
    %2 = tpu.matmul %0, %1, %cst {dimension_numbers = #tpu.dot_dimension_numbers<[1], [0], [0], [1], [0, 0, 1, 1], [], []>} : vector<128x16xbf16>, vector<16x128xbf16>, vector<128x128xf32> -> vector<128x128xf32>
    %3 = arith.truncf %2 : vector<128x128xf32> to vector<128x128xbf16>
    %c0_3 = arith.constant 0 : index
    %c0_4 = arith.constant 0 : index
    %4 = vector.load %arg3[%c0_3, %c0_4] : memref<128x128xbf16, #tpu.memory_space<vmem>>, vector<128x128xbf16>
    tpu.vector_store %arg3[%c0_3, %c0_4], %3 {strides = array<i32>} : memref<128x128xbf16, #tpu.memory_space<vmem>>, vector<128x128xbf16>,
    return
  }
  func.func @transform_0(%arg0: i32) -> (i32, i32) {
    %c0_i32 = arith.constant 0 : i32
    %c0_i32_0 = arith.constant 0 : i32
    return %arg0, %c0_i32 : i32, i32
  }
  func.func @transform_1(%arg0: i32) -> (i32, i32) {
    %c0_i32 = arith.constant 0 : i32
    %c0_i32_0 = arith.constant 0 : i32
    %c0_i32_1 = arith.constant 0 : i32
    return %c0_i32, %c0_i32_0 : i32, i32
  }
  func.func @transform_2(%arg0: i32) -> (i32, i32) {
    %c0_i32 = arith.constant 0 : i32
    %c0_i32_0 = arith.constant 0 : i32
    return %arg0, %c0_i32 : i32, i32
  }
}

module attributes {stable_mosaic.version = 11 : i64} {
  func.func @_matmul_kernel(%arg0: i32, %arg1: memref<256x8xbf16, #tpu.memory_space<vmem>>, %arg2: memref<8x64xbf16, #tpu.memory_space<vmem>>, %arg3: memref<256x64xbf16, #tpu.memory_space<vmem>>) attributes {dimension_semantics = [#tpu.dimension_semantics<parallel>], iteration_bounds = array<i64: 2>, scalar_prefetch = 0 : i64, scratch_operands = 0 : i64, tpu.core_type = #tpu.core_type<tc>, window_params = [{transform_indices = @transform_0, window_bounds = array<i64: 256, 8>}, {pipeline_mode = #tpu.pipeline_mode<synchronous>, transform_indices = @transform_1, window_bounds = array<i64: 8, 64>}, {transform_indices = @transform_2, window_bounds = array<i64: 256, 64>}]} {
    %c0 = arith.constant 0 : index
    %c0_0 = arith.constant 0 : index
    %0 = vector.load %arg1[%c0, %c0_0] : memref<256x8xbf16, #tpu.memory_space<vmem>>, vector<256x8xbf16>
    %c0_1 = arith.constant 0 : index
    %c0_2 = arith.constant 0 : index
    %1 = vector.load %arg2[%c0_1, %c0_2] : memref<8x64xbf16, #tpu.memory_space<vmem>>, vector<8x64xbf16>
    %cst = arith.constant dense<0.000000e+00> : vector<256x64xf32>
    %2 = tpu.matmul %0, %1, %cst {dimension_numbers = #tpu.dot_dimension_numbers<[1], [0], [0], [1], [0, 0, 1, 1], [], []>} : vector<256x8xbf16>, vector<8x64xbf16>, vector<256x64xf32> -> vector<256x64xf32>
    %3 = arith.truncf %2 : vector<256x64xf32> to vector<256x64xbf16>
    %c0_3 = arith.constant 0 : index
    %c0_4 = arith.constant 0 : index
    %4 = vector.load %arg3[%c0_3, %c0_4] : memref<256x64xbf16, #tpu.memory_space<vmem>>, vector<256x64xbf16>
    tpu.vector_store %arg3[%c0_3, %c0_4], %3 {strides = array<i32>} : memref<256x64xbf16, #tpu.memory_space<vmem>>, vector<256x64xbf16>,
    return
  }
  func.func @transform_0(%arg0: i32) -> (i32, i32) {
    %c0_i32 = arith.constant 0 : i32
    %c0_i32_0 = arith.constant 0 : i32
    return %arg0, %c0_i32 : i32, i32
  }
  func.func @transform_1(%arg0: i32) -> (i32, i32) {
    %c0_i32 = arith.constant 0 : i32
    %c0_i32_0 = arith.constant 0 : i32
    %c0_i32_1 = arith.constant 0 : i32
    return %c0_i32, %c0_i32_0 : i32, i32
  }
  func.func @transform_2(%arg0: i32) -> (i32, i32) {
    %c0_i32 = arith.constant 0 : i32
    %c0_i32_0 = arith.constant 0 : i32
    return %arg0, %c0_i32 : i32, i32
  }
}

module attributes {stable_mosaic.version = 11 : i64} {
  func.func @_bias_relu_conv1x1_kernel(%arg0: i32, %arg1: memref<256x4xf32, #tpu.memory_space<vmem>>, %arg2: memref<1x4xf32, #tpu.memory_space<vmem>>, %arg3: memref<4x4xf32, #tpu.memory_space<vmem>>, %arg4: memref<256x4xf32, #tpu.memory_space<vmem>>) attributes {dimension_semantics = [#tpu.dimension_semantics<parallel>], iteration_bounds = array<i64: 8>, scalar_prefetch = 0 : i64, scratch_operands = 0 : i64, tpu.core_type = #tpu.core_type<tc>, window_params = [{transform_indices = @transform_0, window_bounds = array<i64: 256, 4>}, {pipeline_mode = #tpu.pipeline_mode<synchronous>, transform_indices = @transform_1, window_bounds = array<i64: 1, 4>}, {pipeline_mode = #tpu.pipeline_mode<synchronous>, transform_indices = @transform_2, window_bounds = array<i64: 4, 4>}, {transform_indices = @transform_3, window_bounds = array<i64: 256, 4>}]} {
    %c0 = arith.constant 0 : index
    %c0_0 = arith.constant 0 : index
    %0 = vector.load %arg1[%c0, %c0_0] : memref<256x4xf32, #tpu.memory_space<vmem>>, vector<256x4xf32>
    %c0_1 = arith.constant 0 : index
    %c0_2 = arith.constant 0 : index
    %1 = vector.load %arg2[%c0_1, %c0_2] : memref<1x4xf32, #tpu.memory_space<vmem>>, vector<1x4xf32>
    %2 = vector.broadcast %1 : vector<1x4xf32> to vector<256x4xf32>
    %3 = arith.addf %0, %2 : vector<256x4xf32>
    %cst = arith.constant 0.000000e+00 : f32
    %4 = vector.broadcast %cst : f32 to vector<256x4xf32>
    %5 = arith.maximumf %3, %4 : vector<256x4xf32>
    %c0_3 = arith.constant 0 : index
    %c0_4 = arith.constant 0 : index
    %6 = vector.load %arg3[%c0_3, %c0_4] : memref<4x4xf32, #tpu.memory_space<vmem>>, vector<4x4xf32>
    %cst_5 = arith.constant dense<0.000000e+00> : vector<256x4xf32>
    %7 = tpu.matmul %5, %6, %cst_5 {dimension_numbers = #tpu.dot_dimension_numbers<[1], [0], [0], [1], [0, 0, 1, 1], [], []>} : vector<256x4xf32>, vector<4x4xf32>, vector<256x4xf32> -> vector<256x4xf32>
    %c0_6 = arith.constant 0 : index
    %c0_7 = arith.constant 0 : index
    %8 = vector.load %arg4[%c0_6, %c0_7] : memref<256x4xf32, #tpu.memory_space<vmem>>, vector<256x4xf32>
    tpu.vector_store %arg4[%c0_6, %c0_7], %7 {strides = array<i32>} : memref<256x4xf32, #tpu.memory_space<vmem>>, vector<256x4xf32>,
    return
  }
  func.func @transform_0(%arg0: i32) -> (i32, i32) {
    %c0_i32 = arith.constant 0 : i32
    %c0_i32_0 = arith.constant 0 : i32
    return %arg0, %c0_i32 : i32, i32
  }
  func.func @transform_1(%arg0: i32) -> (i32, i32) {
    %c0_i32 = arith.constant 0 : i32
    %c0_i32_0 = arith.constant 0 : i32
    %c0_i32_1 = arith.constant 0 : i32
    return %c0_i32, %c0_i32_0 : i32, i32
  }
  func.func @transform_2(%arg0: i32) -> (i32, i32) {
    %c0_i32 = arith.constant 0 : i32
    %c0_i32_0 = arith.constant 0 : i32
    %c0_i32_1 = arith.constant 0 : i32
    return %c0_i32, %c0_i32_0 : i32, i32
  }
  func.func @transform_3(%arg0: i32) -> (i32, i32) {
    %c0_i32 = arith.constant 0 : i32
    %c0_i32_0 = arith.constant 0 : i32
    return %arg0, %c0_i32 : i32, i32
  }
}

</mosaic_0001>

<bundles_post_ra>
// kernel: gn_forward.6
= control target key start
LH: loop header
LB: loop body
LE: loop exit
PB: predicated region body
PF: predicated region fallthrough
CT: control target
= control target key end

     0   :  { %7 = vsyncpa [#allocation3], 0  ;;  %s191_s12 = smov [#allocation2]   ;;  %s192_s14 = smov 128   ;;  %s230_s0 = inlined_call_operand.vmem [shape: bf16[32,32], index: 0, kind: input, shape index: {}]   ;;  %s231_s1 = inlined_call_operand.hbm [shape: bf16[32,256], index: 1, kind: input, shape index: {}]   ;;  %s232_s2 = inlined_call_operand.vmem [shape: bf16[32,256], index: 2, kind: output, shape index: {}]  }
   0x1   :  { %s14_s11 = sshll.u32 %s231_s1, 4  ;;  %s16_s13 = sshll.u32 %s191_s12, 4  ;;  %s15_s11 = int_to_ptr.hbm [resolvable:$true] %s14_s11  ;;  %s17_s13 = int_to_ptr.vmem [resolvable:$true] %s16_s13 }
   0x2   :  { %s193_s15 = smov 8  }
   0x3   :  { %22 = dma.hbm_to_vmem [thread:$0]  %s15_s11, 512, %s17_s13, [#allocation3], %s192_s14, %s192_s14, %s193_s15  }
   0x4   :  { %189 = dma.done.wait [#allocation3], 512  }
   0x5   :  { %190 = vsyncadd [#allocation3], 4294966784  ;;  %v142_v0 = vld [vmem:[#allocation2 + $0x10] sm:$0xf]  ;;  %v157_v1 = vld [vmem:[#allocation2 + $0x14] sm:$0xf0] }
   0x6   :  { %v156_v2 = vld [vmem:[#allocation2 + $0x14] sm:$0xf]  ;;  %v143_v3 = vor.u32 %v157_v1, %v142_v0  ;;  %v144_v4 = vld [vmem:[#allocation2 + $0x18] sm:$0xf0]  ;;  %v134_v5 = vld [vmem:[#allocation2] sm:$0xf] }
   0x7   :  { %v155_v6 = vld [vmem:[#allocation2 + $0x4] sm:$0xf0]  ;;  %v147_v7 = vor.u32 %v156_v2, %v144_v4  ;;  %v154_v8 = vld [vmem:[#allocation2 + $0x4] sm:$0xf]  ;;  %v136_v9 = vld [vmem:[#allocation2 + $0x8] sm:$0xf0] }
   0x8   :  { %79 = vmatpush.bf16.msra.mxu0 %v143_v3  ;;  %158 = vmatpush.bf16.msra.mxu2 %v143_v3  ;;  %v135_v10 = vor.u32 %v155_v6, %v134_v5  ;;  %v139_v11 = vor.u32 %v154_v8, %v136_v9  ;;  %v152_v12 = vld [vmem:[%s230_s0] sm:$0xff]  ;;  %v153_v13 = vld [vmem:[%s230_s0 + $0x8] sm:$0xff]  ;;  %vm66_vm0 = vcmask 261120  }
   0x9   :  { %98 = vmatpush.bf16.msra.mxu1 %v147_v7  ;;  %160 = vmatpush.bf16.msra.mxu3 %v147_v7 }
   0xc   :  { %80 = vmatpush.bf16.msra.mxu0 %v135_v10  ;;  %159 = vmatpush.bf16.msra.mxu2 %v135_v10 }
   0xd   :  { %99 = vmatpush.bf16.msra.mxu1 %v139_v11  ;;  %161 = vmatpush.bf16.msra.mxu3 %v139_v11 }
   0xf   :  { %148 = vmatmul.msk.bf16.vlgmr.msra.gmra.mxu0 %vm66_vm0, %v152_v12  ;;  %149 = vmatmul.msk.bf16.vlgmr.msra.gmra.mxu2 %vm66_vm0, %v153_v13 }
  0x10   :  { %150 = vmatmul.msk.bf16.vlgmr.msra.gmra.mxu1 %vm66_vm0, %v152_v12  ;;  %151 = vmatmul.msk.bf16.vlgmr.msra.gmra.mxu3 %vm66_vm0, %v153_v13 }
  0x8c   :  { %v82_v14 = vpop.f32.mrf.mxu0 }
  0x8d   :  { %v101_v15 = vpop.f32.mrf.mxu1 }
  0x8e   :  { %v111_v16 = vpack.c.bf16 %v101_v15, %v82_v14 }
  0x90   :  { %115 = vst [vmem:[%s232_s2] sm:$0xff] %v111_v16 }
  0x92   :  { %v87_v17 = vpop.f32.mrf.mxu2 }
  0x93   :  { %v106_v18 = vpop.f32.mrf.mxu3 }
  0x94   :  { %v113_v19 = vpack.c.bf16 %v106_v18, %v87_v17  ;;  %v84_v20 = vpop.f32.mrf.mxu0 }
  0x95   :  { %v103_v21 = vpop.f32.mrf.mxu1 }
  0x96   :  { %117 = vst [vmem:[%s232_s2 + $0x10] sm:$0xff] %v113_v19  ;;  %v112_v22 = vpack.c.bf16 %v103_v21, %v84_v20 }
  0x98   :  { %116 = vst [vmem:[%s232_s2 + $0x8] sm:$0xff] %v112_v22 }
  0x9a   :  { %v89_v23 = vpop.f32.mrf.mxu2 }
  0x9b   :  { %v108_v24 = vpop.f32.mrf.mxu3 }
  0x9c   :  { %v114_v25 = vpack.c.bf16 %v108_v24, %v89_v23 }
  0x9e   :  { %118 = vst [vmem:[%s232_s2 + $0x18] sm:$0xff] %v114_v25 }
  0x9f   :  { %123 = vsyncpa [#allocation3], 1 }

// kernel: gn_forward.5
= control target key start
LH: loop header
LB: loop body
LE: loop exit
PB: predicated region body
PF: predicated region fallthrough
CT: control target
= control target key end

     0   :  { %12 = vsyncpa [#allocation3], 0  ;;  %s653_s0 = inlined_call_operand.hbm [shape: f32[2,10], index: 0, kind: input, shape index: {}]   ;;  %s654_s1 = inlined_call_operand.hbm [shape: f32[10,20], index: 1, kind: input, shape index: {}]   ;;  %s655_s2 = inlined_call_operand.hbm [shape: f32[1,20], index: 2, kind: input, shape index: {}]   ;;  %s656_s3 = inlined_call_operand.hbm [shape: f32[20,128], index: 3, kind: input, shape index: {}]   ;;  %s657_s4 = inlined_call_operand.hbm [shape: f32[1,128], index: 4, kind: input, shape index: {}]   ;;  %s658_s5 = inlined_call_operand.hbm [shape: f32[128,512], index: 5, kind: input, shape index: {}]   ;;  %s659_s6 = inlined_call_operand.hbm [shape: f32[1,512], index: 6, kind: input, shape index: {}]   ;;  %s660_s7 = inlined_call_operand.vmem [shape: bf16[2,512], index: 7, kind: output, shape index: {}]  }
   0x1   :  { %13 = vsyncpa [#allocation5], 0 }
   0x2   :  { %14 = vsyncpa [#allocation8], 0  ;;  %s31_s26 = sshll.u32 %s654_s1, 4  ;;  %s32_s26 = int_to_ptr.hbm [resolvable:$true] %s31_s26 }
   0x3   :  { %15 = vsyncpa [#allocation11], 0  ;;  %s576_s27 = smov [#allocation4]   ;;  %s55_s8 = sshll.u32 %s656_s3, 4  ;;  %s56_s8 = int_to_ptr.hbm [resolvable:$true] %s55_s8 }
   0x4   :  { %s33_s28 = sshll.u32 %s576_s27, 4  ;;  %s577_s9 = smov 128   ;;  %s34_s28 = int_to_ptr.vmem [resolvable:$true] %s33_s28 }
   0x5   :  { %s578_s10 = smov 8   ;;  %s579_s11 = smov [#allocation7]  }
   0x6   :  { %39 = dma.hbm_to_vmem [thread:$0]  %s32_s26, 256, %s34_s28, [#allocation5], %s577_s9, %s577_s9, %s578_s10  }
   0x7   :  { %s57_s12 = sshll.u32 %s579_s11, 4  ;;  %s79_s15 = sshll.u32 %s658_s5, 4  ;;  %s58_s12 = int_to_ptr.vmem [resolvable:$true] %s57_s12  ;;  %s80_s15 = int_to_ptr.hbm [resolvable:$true] %s79_s15 }
   0x8   :  { %63 = dma.hbm_to_vmem [thread:$0]  %s56_s8, 384, %s58_s12, [#allocation8], %s577_s9, %s577_s9, %s578_s10  }
   0x9   :  { %s580_s1 = smov [#allocation10]   ;;  %s21_s3 = sshll.u32 %s653_s0, 4  ;;  %s22_s3 = int_to_ptr.hbm [resolvable:$true] %s21_s3 }
   0xa   :  { %s81_s16 = sshll.u32 %s580_s1, 4  ;;  %s581_s19 = smov 512   ;;  %s82_s16 = int_to_ptr.vmem [resolvable:$true] %s81_s16 }
   0xb   :  { %s582_s20 = smov 32   ;;  %s583_s21 = smov [#allocation2]  }
   0xc   :  { %87 = dma.hbm_to_vmem [thread:$0]  %s80_s15, 8192, %s82_s16, [#allocation11], %s581_s19, %s581_s19, %s582_s20  }
   0xd   :  { %s23_s22 = sshll.u32 %s583_s21, 4  ;;  %s45_s5 = sshll.u32 %s655_s2, 4  ;;  %s24_s22 = int_to_ptr.vmem [resolvable:$true] %s23_s22  ;;  %s46_s5 = int_to_ptr.hbm [resolvable:$true] %s45_s5 }
   0xe   :  { %26 = dma.hbm_to_vmem [thread:$0]  %s22_s3, 32, %s24_s22, [#allocation3]  }
   0xf   :  { %s69_s27 = sshll.u32 %s657_s4, 4  ;;  %s584_s28 = smov [#allocation6]   ;;  %s70_s27 = int_to_ptr.hbm [resolvable:$true] %s69_s27 }
  0x10   :  { %s47_s29 = sshll.u32 %s584_s28, 4  ;;  %s585_s0 = smov [#allocation9]   ;;  %s48_s29 = int_to_ptr.vmem [resolvable:$true] %s47_s29 }
  0x11   :  { %50 = dma.hbm_to_vmem [thread:$0]  %s46_s5, 16, %s48_s29, [#allocation5]  }
  0x12   :  { %s71_s30 = sshll.u32 %s585_s0, 4  ;;  %s93_s10 = sshll.u32 %s659_s6, 4  ;;  %s72_s30 = int_to_ptr.vmem [resolvable:$true] %s71_s30  ;;  %s94_s10 = int_to_ptr.hbm [resolvable:$true] %s93_s10 }
  0x13   :  { %74 = dma.hbm_to_vmem [thread:$0]  %s70_s27, 16, %s72_s30, [#allocation8]  }
  0x14   :  { %s586_s2 = smov [#allocation12]  }
  0x15   :  { %s95_s11 = sshll.u32 %s586_s2, 4  ;;  %s96_s11 = int_to_ptr.vmem [resolvable:$true] %s95_s11 }
  0x16   :  { %98 = dma.hbm_to_vmem [thread:$0]  %s94_s10, 64, %s96_s11, [#allocation11]  }
  0x17   :  { %568 = dma.done.wait [#allocation3], 32  }
  0x18   :  { %569 = vsyncadd [#allocation3], 4294967264 }
  0x19   :  { %570 = dma.done.wait [#allocation5], 272  }
  0x1a   :  { %571 = vsyncadd [#allocation5], 4294967024 }
  0x1b   :  { %572 = dma.done.wait [#allocation8], 400  }
  0x1c   :  { %573 = vsyncadd [#allocation8], 4294966896 }
  0x1d   :  { %574 = dma.done.wait [#allocation11], 8256  }
  0x1e   :  { %575 = vsyncadd [#allocation11], 4294959040  ;;  %vm138_vm0 = vcmask 1041408   ;;  %v129_v0 = vld [vmem:[#allocation4 + $0x8] sm:$0x3]  ;;  %v128_v1 = vld [vmem:[#allocation4] sm:$0xff] }
  0x1f   :  { %vm134_vm1 = vcmask 80896   ;;  %383 = vmatpush.msk.msra.mxu0 %vm138_vm0, %v129_v0  ;;  %v127_v2 = vld [vmem:[#allocation2] sm:$0x3]  ;;  %v165_v3 = vld [vmem:[#allocation7 + $0x10] sm:$0xf]  ;;  %vm174_vm2 = vcmask 1043456  }
  0x20   :  { %385 = vmatpush.msk.msra.mxu1 %vm174_vm2, %v165_v3  ;;  %v164_v4 = vld [vmem:[#allocation7 + $0x8] sm:$0xff]  ;;  %v163_v5 = vld [vmem:[#allocation7] sm:$0xff]  ;;  %v262_v9 = vld [vmem:[#allocation10 + $0x1f8] sm:$0xff]  ;;  %vm170_vm3 = vcmask 162816   ;;  %vm368_vm4 = vcmask 1042434   ;;  %vm364_vm5 = vcmask 1040384  }
  0x21   :  { %157 = vmatpush.msra.mxu0 %v128_v1  ;;  %v259_v6 = vld [vmem:[#allocation10 + $0x1e0] sm:$0xff]  ;;  %v260_v7 = vld [vmem:[#allocation10 + $0x1e8] sm:$0xff]  ;;  %v261_v8 = vld [vmem:[#allocation10 + $0x1f0] sm:$0xff] }
  0x22   :  { %384 = vmatmul.msk.f32.vlgmr.msra.gmra.mxu0 %vm134_vm1, %v127_v2  ;;  %192 = vmatpush.msra.mxu1 %v164_v4  ;;  %v255_v10 = vld [vmem:[#allocation10 + $0x1c0] sm:$0xff]  ;;  %v256_v11 = vld [vmem:[#allocation10 + $0x1c8] sm:$0xff]  ;;  %v257_v12 = vld [vmem:[#allocation10 + $0x1d0] sm:$0xff] }
  0x23   :  { %273 = vmatpush.msra.mxu2 %v259_v6  ;;  %293 = vmatpush.msra.mxu3 %v260_v7  ;;  %v258_v13 = vld [vmem:[#allocation10 + $0x1d8] sm:$0xff]  ;;  %v251_v14 = vld [vmem:[#allocation10 + $0x1a0] sm:$0xff]  ;;  %v252_v15 = vld [vmem:[#allocation10 + $0x1a8] sm:$0xff] }
  0x24   :  { %193 = vmatpush.msra.mxu1 %v163_v5  ;;  %313 = vmatpush.msrb.mxu0 %v261_v8  ;;  %v253_v16 = vld [vmem:[#allocation10 + $0x1b0] sm:$0xff]  ;;  %v254_v17 = vld [vmem:[#allocation10 + $0x1b8] sm:$0xff]  ;;  %v247_v18 = vld [vmem:[#allocation10 + $0x180] sm:$0xff] }
  0x25   :  { %274 = vmatpush.msra.mxu2 %v255_v10  ;;  %294 = vmatpush.msra.mxu3 %v256_v11  ;;  %v248_v19 = vld [vmem:[#allocation10 + $0x188] sm:$0xff]  ;;  %v249_v20 = vld [vmem:[#allocation10 + $0x190] sm:$0xff]  ;;  %v250_v21 = vld [vmem:[#allocation10 + $0x198] sm:$0xff] }
  0x26   :  { %333 = vmatpush.msrb.mxu1 %v262_v9  ;;  %314 = vmatpush.msrb.mxu0 %v257_v12  ;;  %v243_v22 = vld [vmem:[#allocation10 + $0x160] sm:$0xff]  ;;  %v244_v23 = vld [vmem:[#allocation10 + $0x168] sm:$0xff]  ;;  %v245_v24 = vld [vmem:[#allocation10 + $0x170] sm:$0xff] }
  0x27   :  { %275 = vmatpush.msra.mxu2 %v251_v14  ;;  %295 = vmatpush.msra.mxu3 %v252_v15  ;;  %v246_v25 = vld [vmem:[#allocation10 + $0x178] sm:$0xff]  ;;  %v239_v26 = vld [vmem:[#allocation10 + $0x140] sm:$0xff]  ;;  %v240_v27 = vld [vmem:[#allocation10 + $0x148] sm:$0xff] }
  0x28   :  { %334 = vmatpush.msrb.mxu1 %v258_v13  ;;  %315 = vmatpush.msrb.mxu0 %v253_v16  ;;  %v241_v28 = vld [vmem:[#allocation10 + $0x150] sm:$0xff]  ;;  %v242_v29 = vld [vmem:[#allocation10 + $0x158] sm:$0xff]  ;;  %v235_v30 = vld [vmem:[#allocation10 + $0x120] sm:$0xff] }
  0x29   :  { %276 = vmatpush.msra.mxu2 %v247_v18  ;;  %296 = vmatpush.msra.mxu3 %v248_v19  ;;  %v236_v31 = vld [vmem:[#allocation10 + $0x128] sm:$0xff]  ;;  %v237_v32 = vld [vmem:[#allocation10 + $0x130] sm:$0xff]  ;;  %v238_v33 = vld [vmem:[#allocation10 + $0x138] sm:$0xff] }
  0x2a   :  { %335 = vmatpush.msrb.mxu1 %v254_v17  ;;  %316 = vmatpush.msrb.mxu0 %v249_v20  ;;  %v231_v34 = vld [vmem:[#allocation10 + $0x100] sm:$0xff]  ;;  %v232_v35 = vld [vmem:[#allocation10 + $0x108] sm:$0xff]  ;;  %v233_v36 = vld [vmem:[#allocation10 + $0x110] sm:$0xff] }
  0x2b   :  { %277 = vmatpush.msra.mxu2 %v243_v22  ;;  %297 = vmatpush.msra.mxu3 %v244_v23  ;;  %v234_v37 = vld [vmem:[#allocation10 + $0x118] sm:$0xff]  ;;  %v227_v38 = vld [vmem:[#allocation10 + $0xe0] sm:$0xff]  ;;  %v228_v39 = vld [vmem:[#allocation10 + $0xe8] sm:$0xff] }
  0x2c   :  { %336 = vmatpush.msrb.mxu1 %v250_v21  ;;  %317 = vmatpush.msrb.mxu0 %v245_v24  ;;  %v229_v40 = vld [vmem:[#allocation10 + $0xf0] sm:$0xff]  ;;  %v230_v41 = vld [vmem:[#allocation10 + $0xf8] sm:$0xff]  ;;  %v223_v42 = vld [vmem:[#allocation10 + $0xc0] sm:$0xff] }
  0x2d   :  { %278 = vmatpush.msra.mxu2 %v239_v26  ;;  %298 = vmatpush.msra.mxu3 %v240_v27  ;;  %v224_v43 = vld [vmem:[#allocation10 + $0xc8] sm:$0xff]  ;;  %v225_v44 = vld [vmem:[#allocation10 + $0xd0] sm:$0xff]  ;;  %v226_v45 = vld [vmem:[#allocation10 + $0xd8] sm:$0xff] }
  0x2e   :  { %337 = vmatpush.msrb.mxu1 %v246_v25  ;;  %318 = vmatpush.msrb.mxu0 %v241_v28  ;;  %v219_v46 = vld [vmem:[#allocation10 + $0xa0] sm:$0xff]  ;;  %v220_v47 = vld [vmem:[#allocation10 + $0xa8] sm:$0xff]  ;;  %v221_v48 = vld [vmem:[#allocation10 + $0xb0] sm:$0xff] }
  0x2f   :  { %279 = vmatpush.msra.mxu2 %v235_v30  ;;  %299 = vmatpush.msra.mxu3 %v236_v31  ;;  %v222_v49 = vld [vmem:[#allocation10 + $0xb8] sm:$0xff]  ;;  %v215_v50 = vld [vmem:[#allocation10 + $0x80] sm:$0xff]  ;;  %v216_v51 = vld [vmem:[#allocation10 + $0x88] sm:$0xff] }
  0x30   :  { %338 = vmatpush.msrb.mxu1 %v242_v29  ;;  %319 = vmatpush.msrb.mxu0 %v237_v32  ;;  %v217_v52 = vld [vmem:[#allocation10 + $0x90] sm:$0xff]  ;;  %v218_v53 = vld [vmem:[#allocation10 + $0x98] sm:$0xff]  ;;  %v211_v54 = vld [vmem:[#allocation10 + $0x60] sm:$0xff] }
  0x31   :  { %280 = vmatpush.msra.mxu2 %v231_v34  ;;  %300 = vmatpush.msra.mxu3 %v232_v35  ;;  %v212_v55 = vld [vmem:[#allocation10 + $0x68] sm:$0xff]  ;;  %v213_v56 = vld [vmem:[#allocation10 + $0x70] sm:$0xff]  ;;  %v214_v57 = vld [vmem:[#allocation10 + $0x78] sm:$0xff] }
  0x32   :  { %339 = vmatpush.msrb.mxu1 %v238_v33  ;;  %320 = vmatpush.msrb.mxu0 %v233_v36  ;;  %v398_v58 = vld [vmem:[#allocation6] ss:$0 sm:$0xff]  ;;  %v208_v63 = vld [vmem:[#allocation10 + $0x48] sm:$0xff]  ;;  %v209_v0 = vld [vmem:[#allocation10 + $0x50] sm:$0xff] }
  0x33   :  { %281 = vmatpush.msra.mxu2 %v227_v38  ;;  %301 = vmatpush.msra.mxu3 %v228_v39  ;;  %v207_v62 = vld [vmem:[#allocation10 + $0x40] sm:$0xff]  ;;  %v210_v1 = vld [vmem:[#allocation10 + $0x58] sm:$0xff]  ;;  %v204_v3 = vld [vmem:[#allocation10 + $0x28] sm:$0xff] }
  0x34   :  { %340 = vmatpush.msrb.mxu1 %v234_v37  ;;  %321 = vmatpush.msrb.mxu0 %v229_v40  ;;  %v203_v2 = vld [vmem:[#allocation10 + $0x20] sm:$0xff]  ;;  %v205_v4 = vld [vmem:[#allocation10 + $0x30] sm:$0xff]  ;;  %v206_v5 = vld [vmem:[#allocation10 + $0x38] sm:$0xff] }
  0x35   :  { %282 = vmatpush.msra.mxu2 %v223_v42  ;;  %302 = vmatpush.msra.mxu3 %v224_v43  ;;  %v199_v6 = vld [vmem:[#allocation10] sm:$0xff]  ;;  %v200_v7 = vld [vmem:[#allocation10 + $0x8] sm:$0xff]  ;;  %v201_v8 = vld [vmem:[#allocation10 + $0x10] sm:$0xff] }
  0x36   :  { %341 = vmatpush.msrb.mxu1 %v230_v41  ;;  %322 = vmatpush.msrb.mxu0 %v225_v44  ;;  %v202_v9 = vld [vmem:[#allocation10 + $0x18] sm:$0xff]  ;;  %v263_v14 = vld [vmem:[#allocation12] sm:$0xf] }
  0x37   :  { %283 = vmatpush.msra.mxu2 %v219_v46  ;;  %303 = vmatpush.msra.mxu3 %v220_v47  ;;  %v399_v10 = vld [vmem:[#allocation9] ss:$0 sm:$0xff]  ;;  %v267_v15 = vperm.slane %v263_v14, 2  ;;  %v268_v16 = vperm.slane %v263_v14, 3  ;;  %v265_v21 = vperm.slane %v263_v14, 0  ;;  %v266_v22 = vperm.slane %v263_v14, 1 }
  0x38   :  { %342 = vmatpush.msrb.mxu1 %v226_v45  ;;  %323 = vmatpush.msrb.mxu0 %v221_v48 }
  0x39   :  { %284 = vmatpush.msra.mxu2 %v215_v50  ;;  %304 = vmatpush.msra.mxu3 %v216_v51 }
  0x3a   :  { %343 = vmatpush.msrb.mxu1 %v222_v49  ;;  %324 = vmatpush.msrb.mxu0 %v217_v52 }
  0x3b   :  { %285 = vmatpush.msra.mxu2 %v211_v54  ;;  %305 = vmatpush.msra.mxu3 %v212_v55 }
  0x3c   :  { %344 = vmatpush.msrb.mxu1 %v218_v53  ;;  %325 = vmatpush.msrb.mxu0 %v213_v56 }
  0x3d   :  { %286 = vmatpush.msra.mxu2 %v207_v62  ;;  %306 = vmatpush.msra.mxu3 %v208_v63 }
  0x3e   :  { %345 = vmatpush.msrb.mxu1 %v214_v57  ;;  %326 = vmatpush.msrb.mxu0 %v209_v0 }
  0x3f   :  { %287 = vmatpush.msra.mxu2 %v203_v2  ;;  %307 = vmatpush.msra.mxu3 %v204_v3 }
  0x40   :  { %346 = vmatpush.msrb.mxu1 %v210_v1  ;;  %327 = vmatpush.msrb.mxu0 %v205_v4 }
  0x41   :  { %288 = vmatpush.msra.mxu2 %v199_v6  ;;  %308 = vmatpush.msra.mxu3 %v200_v7 }
  0x42   :  { %347 = vmatpush.msrb.mxu1 %v206_v5  ;;  %328 = vmatpush.msrb.mxu0 %v201_v8 }
  0x44   :  { %348 = vmatpush.msrb.mxu1 %v202_v9 }
  0x9f   :  { %v159_v59 = vpop.f32.mrf.mxu0 }
  0xa0   :  { %v160_v60 = vadd.f32 %v398_v58, %v159_v59 }
  0xa2   :  { %v162_v61 = vmax.f32 %v160_v60, 0.0 }
  0xa4   :  { %386 = vmatmul.msk.f32.vlgmr.msra.gmra.mxu1 %vm170_vm3, %v162_v61 }
 0x121   :  { %v195_v11 = vpop.f32.mrf.mxu1 }
 0x122   :  { %v196_v12 = vadd.f32 %v399_v10, %v195_v11 }
 0x124   :  { %v198_v13 = vmax.f32 %v196_v12, 0.0 }
 0x126   :  { %289 = vmatmul.f32.vlgmr.msra.gmra.mxu2 %v198_v13  ;;  %309 = vmatmul.f32.vlgmr.msra.gmra.mxu3 %v198_v13 }
 0x127   :  { %329 = vmatmul.f32.vlgmr.msrb.gmra.mxu0 %v198_v13  ;;  %349 = vmatmul.f32.vlgmr.msrb.gmra.mxu1 %v198_v13 }
 0x1a4   :  { %v330_v17 = vpop.f32.mrf.mxu0  ;;  %v350_v18 = vpop.f32.mrf.mxu1 }
 0x1a5   :  { %v331_v19 = vadd.f32 %v330_v17, %v267_v15  ;;  %v351_v20 = vadd.f32 %v350_v18, %v268_v16 }
 0x1a7   :  { %v355_v23 = vmax.f32 %v331_v19, 0.0  ;;  %v356_v24 = vmax.f32 %v351_v20, 0.0 }
 0x1a9   :  { %v290_v25 = vpop.f32.mrf.mxu2  ;;  %v310_v26 = vpop.f32.mrf.mxu3  ;;  %v358_v27 = vpack.c.bf16 %v356_v24, %v355_v23 }
 0x1aa   :  { %v291_v28 = vadd.f32 %v290_v25, %v265_v21  ;;  %v311_v29 = vadd.f32 %v310_v26, %v266_v22 }
 0x1ab   :  { %v362_v32 = vrot.slane %v358_v27, 6  ;;  %v363_v33 = vrot.slane %v358_v27, 1 }
 0x1ac   :  { %v353_v30 = vmax.f32 %v291_v28, 0.0  ;;  %v354_v31 = vmax.f32 %v311_v29, 0.0 }
 0x1ad   :  { %v371_v36 = vsel %vm368_vm4, %v362_v32, %v363_v33 }
 0x1ae   :  { %v357_v34 = vpack.c.bf16 %v354_v31, %v353_v30 }
 0x1b0   :  { %v361_v35 = vrot.slane %v357_v34, 3 }
 0x1b2   :  { %v367_v37 = vsel %vm364_vm5, %v357_v34, %v361_v35 }
 0x1b3   :  { %v372_v38 = vsel %vm138_vm0, %v367_v37, %v371_v36 }
 0x1b4   :  { %374 = vst [vmem:[%s660_s7] sm:$0xf] %v372_v38 }
 0x1b5   :  { %379 = vsyncpa [#allocation3], 1 }
 0x1b6   :  { %380 = vsyncpa [#allocation5], 1 }
 0x1b7   :  { %381 = vsyncpa [#allocation8], 1 }
 0x1b8   :  { %382 = vsyncpa [#allocation11], 1 }

// kernel: gn_forward.7
= control target key start
LH: loop header
LB: loop body
LE: loop exit
PB: predicated region body
PF: predicated region fallthrough
CT: control target
= control target key end

     0   :  { %7 = vsyncpa [#allocation3], 0  ;;  %s335_s12 = smov [#allocation2]   ;;  %s336_s14 = smov 64   ;;  %s412_s0 = inlined_call_operand.vmem [shape: bf16[128,16], index: 0, kind: input, shape index: {}]   ;;  %s413_s1 = inlined_call_operand.hbm [shape: bf16[16,128], index: 1, kind: input, shape index: {}]   ;;  %s414_s2 = inlined_call_operand.vmem [shape: bf16[128,128], index: 2, kind: output, shape index: {}]  }
   0x1   :  { %s14_s11 = sshll.u32 %s413_s1, 4  ;;  %s16_s13 = sshll.u32 %s335_s12, 4  ;;  %s15_s11 = int_to_ptr.hbm [resolvable:$true] %s14_s11  ;;  %s17_s13 = int_to_ptr.vmem [resolvable:$true] %s16_s13 }
   0x2   :  { %s337_s15 = smov 4  }
   0x3   :  { %22 = dma.hbm_to_vmem [thread:$0]  %s15_s11, 128, %s17_s13, [#allocation3], %s336_s14, %s336_s14, %s337_s15  }
   0x4   :  { %333 = dma.done.wait [#allocation3], 128  }
   0x5   :  { %334 = vsyncadd [#allocation3], 4294967168  ;;  %v255_v0 = vld [vmem:[#allocation2] sm:$0xff]  ;;  %v249_v2 = vld [vmem:[%s412_s0 + $0x10] sm:$0xff]  ;;  %vm92_vm0 = vcmask 130048  }
   0x6   :  { %v247_v1 = vld [vmem:[%s412_s0] sm:$0xff]  ;;  %124 = vmatpush.bf16.msra.mxu0 %v255_v0  ;;  %303 = vmatpush.bf16.msra.mxu1 %v255_v0  ;;  %v253_v4 = vld [vmem:[%s412_s0 + $0x30] sm:$0xff]  ;;  %v248_v5 = vld [vmem:[%s412_s0 + $0x8] sm:$0xff] }
   0x7   :  { %v251_v3 = vld [vmem:[%s412_s0 + $0x20] sm:$0xff]  ;;  %304 = vmatpush.bf16.msra.mxu2 %v255_v0  ;;  %305 = vmatpush.bf16.msra.mxu3 %v255_v0  ;;  %v250_v6 = vld [vmem:[%s412_s0 + $0x18] sm:$0xff]  ;;  %v252_v7 = vld [vmem:[%s412_s0 + $0x28] sm:$0xff] }
   0x8   :  { %v254_v8 = vld [vmem:[%s412_s0 + $0x38] sm:$0xff] }
   0x9   :  { %239 = vmatmul.msk.bf16.vlgmr.msra.gmra.mxu0 %vm92_vm0, %v247_v1  ;;  %241 = vmatmul.msk.bf16.vlgmr.msra.gmra.mxu1 %vm92_vm0, %v249_v2 }
   0xa   :  { %243 = vmatmul.msk.bf16.vlgmr.msra.gmra.mxu2 %vm92_vm0, %v251_v3  ;;  %245 = vmatmul.msk.bf16.vlgmr.msra.gmra.mxu3 %vm92_vm0, %v253_v4 }
  0x19   :  { %240 = vmatmul.msk.bf16.gmra.mxu0 %vm92_vm0, %v248_v5  ;;  %242 = vmatmul.msk.bf16.gmra.mxu1 %vm92_vm0, %v250_v6 }
  0x1a   :  { %244 = vmatmul.msk.bf16.gmra.mxu2 %vm92_vm0, %v252_v7  ;;  %246 = vmatmul.msk.bf16.gmra.mxu3 %vm92_vm0, %v254_v8 }
  0x86   :  { %v126_v9 = vpop.f32.mrf.mxu0  ;;  %v136_v10 = vpop.f32.mrf.mxu1 }
  0x8d   :  { %v146_v11 = vpop.f32.mrf.mxu2  ;;  %v156_v12 = vpop.f32.mrf.mxu3 }
  0x8e   :  { %v128_v13 = vpop.f32.mrf.mxu0  ;;  %v138_v14 = vpop.f32.mrf.mxu1 }
  0x8f   :  { %v259_v15 = vpack.c.bf16 %v128_v13, %v126_v9  ;;  %v269_v16 = vpack.c.bf16 %v138_v14, %v136_v10 }
  0x91   :  { %260 = vst [vmem:[%s414_s2] sm:$0xff] %v259_v15  }
  0x92   :  { %297 = vst [vmem:[%s414_s2 + $0x10] sm:$0xff] %v269_v16  }
  0x95   :  { %v148_v17 = vpop.f32.mrf.mxu2  ;;  %v158_v18 = vpop.f32.mrf.mxu3 }
  0x96   :  { %v279_v19 = vpack.c.bf16 %v148_v17, %v146_v11  ;;  %v289_v20 = vpack.c.bf16 %v158_v18, %v156_v12  ;;  %v131_v21 = vpop.f32.mrf.mxu0  ;;  %v141_v22 = vpop.f32.mrf.mxu1 }
  0x98   :  { %299 = vst [vmem:[%s414_s2 + $0x20] sm:$0xff] %v279_v19  }
  0x99   :  { %301 = vst [vmem:[%s414_s2 + $0x30] sm:$0xff] %v289_v20  }
  0x9d   :  { %v151_v23 = vpop.f32.mrf.mxu2  ;;  %v161_v24 = vpop.f32.mrf.mxu3 }
  0x9e   :  { %v133_v25 = vpop.f32.mrf.mxu0  ;;  %v143_v26 = vpop.f32.mrf.mxu1 }
  0x9f   :  { %v264_v27 = vpack.c.bf16 %v133_v25, %v131_v21  ;;  %v274_v28 = vpack.c.bf16 %v143_v26, %v141_v22 }
  0xa1   :  { %296 = vst [vmem:[%s414_s2 + $0x8] sm:$0xff] %v264_v27  }
  0xa2   :  { %298 = vst [vmem:[%s414_s2 + $0x18] sm:$0xff] %v274_v28  }
  0xa5   :  { %v153_v29 = vpop.f32.mrf.mxu2  ;;  %v163_v30 = vpop.f32.mrf.mxu3 }
  0xa6   :  { %v284_v31 = vpack.c.bf16 %v153_v29, %v151_v23  ;;  %v294_v32 = vpack.c.bf16 %v163_v30, %v161_v24 }
  0xa8   :  { %300 = vst [vmem:[%s414_s2 + $0x28] sm:$0xff] %v284_v31  }
  0xa9   :  { %302 = vst [vmem:[%s414_s2 + $0x38] sm:$0xff] %v294_v32  }
  0xaa   :  { %202 = vsyncpa [#allocation3], 1 }

// kernel: gn_forward.8
= control target key start
LH: loop header
LB: loop body
LE: loop exit
PB: predicated region body
PF: predicated region fallthrough
CT: control target
= control target key end

     0   :  { %s665_s9 = smov 0   ;;  %s774_s0 = inlined_call_operand.vmem [shape: bf16[512,8], index: 0, kind: input, shape index: {}]   ;;  %s775_s1 = inlined_call_operand.vmem [shape: bf16[8,64], index: 1, kind: input, shape index: {}]   ;;  %s776_s2 = inlined_call_operand.vmem [shape: bf16[512,64], index: 2, kind: output, shape index: {}]  }
   0x1 LB: > { %s524_s10 = sadd.s32 4294967295, %s648_s9   ;;  %p528_p0 = scmp.ge.s32.totalorder %s648_s9, 1  ;;  %s648_s9 = sphi %s665_s9, %s12_s9  }
   0x2   : > { %p113_p1 = scmp.lt.s32.totalorder %s648_s9, 3 }
   0x4   : > { %p114_p2 = pnand %p528_p0, %p113_p1 }
   0x5   : > { %s529_s13 = sshll.u32 (!%p114_p2), %s524_s10, 5 }
   0x6   : > { %117 = sbr.rel (%p114_p2) target bundleno = 209 (0xd1), region = 28  ;;  %p136_p3 = scmp.lt.s32.totalorder (!%p114_p2), %s529_s13, 63 }
   0xb   : > { %v180_v0 = vld [vmem:[%s775_s1] sm:$0xf]  ;;  %vm310_vm0 = vcmask 1043456   ;;  %s778_s13 = smov (!%p136_p3, %s529_s13), 63  ;;  %vm261_vm1 = vcmask 64512   ;;  %vm435_vm2 = vcmask 519168  }
   0xc   : > { %v312_v1 = vsel %vm310_vm0, %v180_v0, 0  ;;  %s530_s14 = sshll.u32 %s778_s13, 2 }
   0xd   : > { %321 = vmatpush.bf16.msra.mxu0 %v312_v1  ;;  %631 = vmatpush.bf16.msra.mxu1 %v312_v1  ;;  %s139_s17 = scalar_lea.vmem %s774_s0, %s530_s14  ;;  %s705_s20 = scalar_lea.vmem %s776_s2, %s530_s14 }
   0xe   : > { %632 = vmatpush.bf16.msra.mxu2 %v312_v1  ;;  %633 = vmatpush.bf16.msra.mxu3 %v312_v1  ;;  %v615_v2 = vld [vmem:[%s139_s17] sm:$0xff]  ;;  %v616_v6 = vld [vmem:[%s139_s17 + $0x8] sm:$0xff]  ;;  %v617_v10 = vld [vmem:[%s139_s17 + $0x10] sm:$0xff] }
   0xf   : > { %v619_v3 = vld [vmem:[%s139_s17 + $0x20] sm:$0xff]  ;;  %v620_v7 = vld [vmem:[%s139_s17 + $0x28] sm:$0xff]  ;;  %v621_v11 = vld [vmem:[%s139_s17 + $0x30] sm:$0xff] }
  0x10   : > { %v623_v4 = vld [vmem:[%s139_s17 + $0x40] sm:$0xff]  ;;  %597 = vmatmul.msk.bf16.vlgmr.msra.gmra.mxu0 %vm261_vm1, %v615_v2  ;;  %601 = vmatmul.msk.bf16.vlgmr.msra.gmra.mxu1 %vm261_vm1, %v619_v3  ;;  %v624_v8 = vld [vmem:[%s139_s17 + $0x48] sm:$0xff]  ;;  %v625_v12 = vld [vmem:[%s139_s17 + $0x50] sm:$0xff] }
  0x11   : > { %v627_v5 = vld [vmem:[%s139_s17 + $0x60] sm:$0xff]  ;;  %605 = vmatmul.msk.bf16.vlgmr.msra.gmra.mxu2 %vm261_vm1, %v623_v4  ;;  %v628_v9 = vld [vmem:[%s139_s17 + $0x68] sm:$0xff]  ;;  %v629_v13 = vld [vmem:[%s139_s17 + $0x70] sm:$0xff] }
  0x12   : > { %609 = vmatmul.msk.bf16.vlgmr.msra.gmra.mxu3 %vm261_vm1, %v627_v5  ;;  %v618_v14 = vld [vmem:[%s139_s17 + $0x18] sm:$0xff] }
  0x13   : > { %v622_v15 = vld [vmem:[%s139_s17 + $0x38] sm:$0xff] }
  0x14   : > { %v626_v16 = vld [vmem:[%s139_s17 + $0x58] sm:$0xff] }
  0x15   : > { %v630_v17 = vld [vmem:[%s139_s17 + $0x78] sm:$0xff] }
  0x20   : > { %598 = vmatmul.msk.bf16.gmra.mxu0 %vm261_vm1, %v616_v6  ;;  %602 = vmatmul.msk.bf16.gmra.mxu1 %vm261_vm1, %v620_v7 }
  0x21   : > { %606 = vmatmul.msk.bf16.gmra.mxu2 %vm261_vm1, %v624_v8 }
  0x22   : > { %610 = vmatmul.msk.bf16.gmra.mxu3 %vm261_vm1, %v628_v9 }
  0x30   : > { %599 = vmatmul.msk.bf16.gmra.mxu0 %vm261_vm1, %v617_v10  ;;  %603 = vmatmul.msk.bf16.gmra.mxu1 %vm261_vm1, %v621_v11 }
  0x31   : > { %607 = vmatmul.msk.bf16.gmra.mxu2 %vm261_vm1, %v625_v12 }
  0x32   : > { %611 = vmatmul.msk.bf16.gmra.mxu3 %vm261_vm1, %v629_v13 }
  0x40   : > { %600 = vmatmul.msk.bf16.gmra.mxu0 %vm261_vm1, %v618_v14  ;;  %604 = vmatmul.msk.bf16.gmra.mxu1 %vm261_vm1, %v622_v15 }
  0x41   : > { %608 = vmatmul.msk.bf16.gmra.mxu2 %vm261_vm1, %v626_v16 }
  0x42   : > { %612 = vmatmul.msk.bf16.gmra.mxu3 %vm261_vm1, %v630_v17 }
  0x8d   : > { %v323_v18 = vpop.f32.mrf.mxu0  ;;  %v343_v19 = vpop.f32.mrf.mxu1 }
  0x8e   : > { %v403_v20 = vpack.c.bf16 %v323_v18, %v323_v18  ;;  %v411_v21 = vpack.c.bf16 %v343_v19, %v343_v19 }
  0x90   : > { %436 = vst.msk [vmem:[%s705_s20] sm:$0xf] %vm435_vm2, %v403_v20 }
  0x91   : > { %444 = vst.msk [vmem:[%s705_s20 + $0x20] sm:$0xf] %vm435_vm2, %v411_v21 }
  0x94   : > { %v363_v22 = vpop.f32.mrf.mxu2 }
  0x95   : > { %v383_v23 = vpop.f32.mrf.mxu3  ;;  %v419_v24 = vpack.c.bf16 %v363_v22, %v363_v22  ;;  %v325_v26 = vpop.f32.mrf.mxu0 }
  0x96   : > { %v427_v25 = vpack.c.bf16 %v383_v23, %v383_v23  ;;  %v345_v27 = vpop.f32.mrf.mxu1  ;;  %v404_v28 = vpack.c.bf16 %v325_v26, %v325_v26 }
  0x97   : > { %v412_v29 = vpack.c.bf16 %v345_v27, %v345_v27  ;;  %452 = vst.msk [vmem:[%s705_s20 + $0x40] sm:$0xf] %vm435_vm2, %v419_v24 }
  0x98   : > { %460 = vst.msk [vmem:[%s705_s20 + $0x60] sm:$0xf] %vm435_vm2, %v427_v25 }
  0x99   : > { %437 = vst.msk [vmem:[%s705_s20 + $0x4] sm:$0xf] %vm435_vm2, %v404_v28 }
  0x9a   : > { %445 = vst.msk [vmem:[%s705_s20 + $0x24] sm:$0xf] %vm435_vm2, %v412_v29 }
  0x9c   : > { %v365_v30 = vpop.f32.mrf.mxu2 }
  0x9d   : > { %v385_v31 = vpop.f32.mrf.mxu3  ;;  %v420_v32 = vpack.c.bf16 %v365_v30, %v365_v30  ;;  %v328_v34 = vpop.f32.mrf.mxu0 }
  0x9e   : > { %v428_v33 = vpack.c.bf16 %v385_v31, %v385_v31  ;;  %v348_v35 = vpop.f32.mrf.mxu1  ;;  %v405_v36 = vpack.c.bf16 %v328_v34, %v328_v34 }
  0x9f   : > { %v413_v37 = vpack.c.bf16 %v348_v35, %v348_v35  ;;  %453 = vst.msk [vmem:[%s705_s20 + $0x44] sm:$0xf] %vm435_vm2, %v420_v32 }
  0xa0   : > { %461 = vst.msk [vmem:[%s705_s20 + $0x64] sm:$0xf] %vm435_vm2, %v428_v33 }
  0xa1   : > { %438 = vst.msk [vmem:[%s705_s20 + $0x8] sm:$0xf] %vm435_vm2, %v405_v36 }
  0xa2   : > { %446 = vst.msk [vmem:[%s705_s20 + $0x28] sm:$0xf] %vm435_vm2, %v413_v37 }
  0xa4   : > { %v368_v38 = vpop.f32.mrf.mxu2 }
  0xa5   : > { %v388_v39 = vpop.f32.mrf.mxu3  ;;  %v421_v40 = vpack.c.bf16 %v368_v38, %v368_v38  ;;  %v330_v42 = vpop.f32.mrf.mxu0 }
  0xa6   : > { %v429_v41 = vpack.c.bf16 %v388_v39, %v388_v39  ;;  %v350_v43 = vpop.f32.mrf.mxu1  ;;  %v406_v44 = vpack.c.bf16 %v330_v42, %v330_v42 }
  0xa7   : > { %v414_v45 = vpack.c.bf16 %v350_v43, %v350_v43  ;;  %454 = vst.msk [vmem:[%s705_s20 + $0x48] sm:$0xf] %vm435_vm2, %v421_v40 }
  0xa8   : > { %462 = vst.msk [vmem:[%s705_s20 + $0x68] sm:$0xf] %vm435_vm2, %v429_v41 }
  0xa9   : > { %439 = vst.msk [vmem:[%s705_s20 + $0xc] sm:$0xf] %vm435_vm2, %v406_v44 }
  0xaa   : > { %447 = vst.msk [vmem:[%s705_s20 + $0x2c] sm:$0xf] %vm435_vm2, %v414_v45 }
  0xac   : > { %v370_v46 = vpop.f32.mrf.mxu2 }
  0xad   : > { %v390_v47 = vpop.f32.mrf.mxu3  ;;  %v422_v48 = vpack.c.bf16 %v370_v46, %v370_v46  ;;  %v333_v50 = vpop.f32.mrf.mxu0 }
  0xae   : > { %v430_v49 = vpack.c.bf16 %v390_v47, %v390_v47  ;;  %v353_v51 = vpop.f32.mrf.mxu1  ;;  %v407_v52 = vpack.c.bf16 %v333_v50, %v333_v50 }
  0xaf   : > { %v415_v53 = vpack.c.bf16 %v353_v51, %v353_v51  ;;  %455 = vst.msk [vmem:[%s705_s20 + $0x4c] sm:$0xf] %vm435_vm2, %v422_v48 }
  0xb0   : > { %463 = vst.msk [vmem:[%s705_s20 + $0x6c] sm:$0xf] %vm435_vm2, %v430_v49 }
  0xb1   : > { %440 = vst.msk [vmem:[%s705_s20 + $0x10] sm:$0xf] %vm435_vm2, %v407_v52 }
  0xb2   : > { %448 = vst.msk [vmem:[%s705_s20 + $0x30] sm:$0xf] %vm435_vm2, %v415_v53 }
  0xb4   : > { %v373_v54 = vpop.f32.mrf.mxu2 }
  0xb5   : > { %v393_v55 = vpop.f32.mrf.mxu3  ;;  %v423_v56 = vpack.c.bf16 %v373_v54, %v373_v54  ;;  %v335_v58 = vpop.f32.mrf.mxu0 }
  0xb6   : > { %v431_v57 = vpack.c.bf16 %v393_v55, %v393_v55  ;;  %v355_v59 = vpop.f32.mrf.mxu1  ;;  %v408_v60 = vpack.c.bf16 %v335_v58, %v335_v58 }
  0xb7   : > { %v416_v61 = vpack.c.bf16 %v355_v59, %v355_v59  ;;  %456 = vst.msk [vmem:[%s705_s20 + $0x50] sm:$0xf] %vm435_vm2, %v423_v56 }
  0xb8   : > { %464 = vst.msk [vmem:[%s705_s20 + $0x70] sm:$0xf] %vm435_vm2, %v431_v57 }
  0xb9   : > { %441 = vst.msk [vmem:[%s705_s20 + $0x14] sm:$0xf] %vm435_vm2, %v408_v60 }
  0xba   : > { %449 = vst.msk [vmem:[%s705_s20 + $0x34] sm:$0xf] %vm435_vm2, %v416_v61 }
  0xbc   : > { %v375_v62 = vpop.f32.mrf.mxu2 }
  0xbd   : > { %v395_v63 = vpop.f32.mrf.mxu3  ;;  %v424_v0 = vpack.c.bf16 %v375_v62, %v375_v62  ;;  %v338_v2 = vpop.f32.mrf.mxu0 }
  0xbe   : > { %v432_v1 = vpack.c.bf16 %v395_v63, %v395_v63  ;;  %v358_v3 = vpop.f32.mrf.mxu1  ;;  %v409_v4 = vpack.c.bf16 %v338_v2, %v338_v2 }
  0xbf   : > { %v417_v5 = vpack.c.bf16 %v358_v3, %v358_v3  ;;  %457 = vst.msk [vmem:[%s705_s20 + $0x54] sm:$0xf] %vm435_vm2, %v424_v0 }
  0xc0   : > { %465 = vst.msk [vmem:[%s705_s20 + $0x74] sm:$0xf] %vm435_vm2, %v432_v1 }
  0xc1   : > { %442 = vst.msk [vmem:[%s705_s20 + $0x18] sm:$0xf] %vm435_vm2, %v409_v4 }
  0xc2   : > { %450 = vst.msk [vmem:[%s705_s20 + $0x38] sm:$0xf] %vm435_vm2, %v417_v5 }
  0xc4   : > { %v378_v6 = vpop.f32.mrf.mxu2 }
  0xc5   : > { %v398_v7 = vpop.f32.mrf.mxu3  ;;  %v425_v8 = vpack.c.bf16 %v378_v6, %v378_v6  ;;  %v340_v10 = vpop.f32.mrf.mxu0 }
  0xc6   : > { %v433_v9 = vpack.c.bf16 %v398_v7, %v398_v7  ;;  %v360_v11 = vpop.f32.mrf.mxu1  ;;  %v410_v12 = vpack.c.bf16 %v340_v10, %v340_v10 }
  0xc7   : > { %v418_v13 = vpack.c.bf16 %v360_v11, %v360_v11  ;;  %458 = vst.msk [vmem:[%s705_s20 + $0x58] sm:$0xf] %vm435_vm2, %v425_v8 }
  0xc8   : > { %466 = vst.msk [vmem:[%s705_s20 + $0x78] sm:$0xf] %vm435_vm2, %v433_v9 }
  0xc9   : > { %443 = vst.msk [vmem:[%s705_s20 + $0x1c] sm:$0xf] %vm435_vm2, %v410_v12 }
  0xca   : > { %451 = vst.msk [vmem:[%s705_s20 + $0x3c] sm:$0xf] %vm435_vm2, %v418_v13 }
  0xcc   : > { %v380_v14 = vpop.f32.mrf.mxu2 }
  0xcd   : > { %v400_v15 = vpop.f32.mrf.mxu3  ;;  %v426_v16 = vpack.c.bf16 %v380_v14, %v380_v14 }
  0xce   : > { %v434_v17 = vpack.c.bf16 %v400_v15, %v400_v15 }
  0xcf   : > { %459 = vst.msk [vmem:[%s705_s20 + $0x5c] sm:$0xf] %vm435_vm2, %v426_v16 }
  0xd0   : > { %467 = vst.msk [vmem:[%s705_s20 + $0x7c] sm:$0xf] %vm435_vm2, %v434_v17 }
  0xd1 PF: > { %s12_s9 = sadd.s32 1, %s648_s9  }
  0xd2   : > { %p9_p4 = scmp.ge.s32.totalorder %s12_s9, 4  }
  0xd4   :  { %11 = sbr.rel (!%p9_p4) target bundleno = 1 (0x1), region = 58 }

// kernel: gn_forward.9
= control target key start
LH: loop header
LB: loop body
LE: loop exit
PB: predicated region body
PF: predicated region fallthrough
CT: control target
= control target key end

     0   :  { %s661_s12 = smov 0   ;;  %s857_s0 = inlined_call_operand.vmem [shape: f32[2048,4], index: 0, kind: input, shape index: {}]   ;;  %s858_s1 = inlined_call_operand.vmem [shape: f32[1,4], index: 1, kind: input, shape index: {}]   ;;  %s859_s2 = inlined_call_operand.vmem [shape: f32[4,4], index: 2, kind: input, shape index: {}]   ;;  %s860_s3 = inlined_call_operand.vmem [shape: f32[2048,4], index: 3, kind: output, shape index: {}]  }
   0x1 LB: > { %s577_s13 = sadd.s32 4294967295, %s639_s12   ;;  %p581_p0 = scmp.ge.s32.totalorder %s639_s12, 1  ;;  %s639_s12 = sphi %s661_s12, %s13_s12  }
   0x2   : > { %p138_p1 = scmp.lt.s32.totalorder %s639_s12, 9 }
   0x4   : > { %p139_p2 = pnand %p581_p0, %p138_p1 }
   0x5   : > { %s582_s16 = sshll.u32 (!%p139_p2), %s577_s13, 5 }
   0x6   : > { %142 = sbr.rel (%p139_p2) target bundleno = 209 (0xd1), region = 32  ;;  %p163_p3 = scmp.lt.s32.totalorder (!%p139_p2), %s582_s16, 255 }
   0xb   : > { %v274_v0 = vld [vmem:[%s859_s2] sm:$0xf]  ;;  %vm372_vm0 = vcmask 1043456   ;;  %s862_s16 = smov (!%p163_p3, %s582_s16), 255  ;;  %vm275_vm1 = vcmask 31744  }
   0xc   : > { %622 = vmatpush.msk.msra.mxu2 %vm372_vm0, %v274_v0  ;;  %623 = vmatpush.msk.msra.mxu3 %vm372_vm0, %v274_v0  ;;  %v677_v1 = vld [vmem:[%s858_s1] ss:$0 sm:$0xff]  ;;  %s583_s19 = sshll.u32 %s862_s16, 3 }
   0xd   : > { %586 = vmatpush.msk.msra.mxu0 %vm372_vm0, %v274_v0  ;;  %621 = vmatpush.msk.msra.mxu1 %vm372_vm0, %v274_v0  ;;  %s685_s22 = scalar_lea.vmem %s857_s0, %s583_s19  ;;  %s788_s25 = scalar_lea.vmem %s860_s3, %s583_s19 }
   0xe   : > { %v190_v2 = vld [vmem:[%s685_s22 + $0x80] sm:$0xff]  ;;  %v191_v10 = vld [vmem:[%s685_s22 + $0x88] sm:$0xff]  ;;  %v192_v26 = vld [vmem:[%s685_s22 + $0x90] sm:$0xff] }
   0xf   : > { %v198_v3 = vld [vmem:[%s685_s22 + $0xc0] sm:$0xff]  ;;  %v226_v5 = vadd.f32 %v677_v1, %v190_v2  ;;  %v199_v11 = vld [vmem:[%s685_s22 + $0xc8] sm:$0xff]  ;;  %v227_v18 = vadd.f32 %v677_v1, %v191_v10  ;;  %v200_v27 = vld [vmem:[%s685_s22 + $0xd0] sm:$0xff]  ;;  %v228_v30 = vadd.f32 %v677_v1, %v192_v26 }
  0x10   : > { %v174_v4 = vld [vmem:[%s685_s22] sm:$0xff]  ;;  %v234_v6 = vadd.f32 %v677_v1, %v198_v3  ;;  %v175_v15 = vld [vmem:[%s685_s22 + $0x8] sm:$0xff]  ;;  %v235_v19 = vadd.f32 %v677_v1, %v199_v11  ;;  %v176_v28 = vld [vmem:[%s685_s22 + $0x10] sm:$0xff]  ;;  %v236_v31 = vadd.f32 %v677_v1, %v200_v27 }
  0x11   : > { %v210_v7 = vadd.f32 %v677_v1, %v174_v4  ;;  %v182_v8 = vld [vmem:[%s685_s22 + $0x40] sm:$0xff]  ;;  %v258_v12 = vmax.f32 %v226_v5, 0.0  ;;  %v183_v16 = vld [vmem:[%s685_s22 + $0x48] sm:$0xff]  ;;  %v211_v20 = vadd.f32 %v677_v1, %v175_v15  ;;  %v259_v22 = vmax.f32 %v227_v18, 0.0  ;;  %v184_v29 = vld [vmem:[%s685_s22 + $0x50] sm:$0xff] }
  0x12   : > { %v218_v9 = vadd.f32 %v677_v1, %v182_v8  ;;  %v266_v13 = vmax.f32 %v234_v6, 0.0  ;;  %v219_v21 = vadd.f32 %v677_v1, %v183_v16  ;;  %v267_v23 = vmax.f32 %v235_v19, 0.0  ;;  %v193_v38 = vld [vmem:[%s685_s22 + $0x98] sm:$0xff]  ;;  %v194_v50 = vld [vmem:[%s685_s22 + $0xa0] sm:$0xff]  ;;  %v195_v62 = vld [vmem:[%s685_s22 + $0xa8] sm:$0xff] }
  0x13   : > { %v242_v14 = vmax.f32 %v210_v7, 0.0  ;;  %603 = vmatmul.msk.f32.vlgmr.msra.gmra.mxu2 %vm275_vm1, %v258_v12  ;;  %v243_v24 = vmax.f32 %v211_v20, 0.0  ;;  %v212_v32 = vadd.f32 %v677_v1, %v176_v28  ;;  %v220_v33 = vadd.f32 %v677_v1, %v184_v29  ;;  %v201_v39 = vld [vmem:[%s685_s22 + $0xd8] sm:$0xff]  ;;  %v202_v51 = vld [vmem:[%s685_s22 + $0xe0] sm:$0xff]  ;;  %v203_v63 = vld [vmem:[%s685_s22 + $0xe8] sm:$0xff] }
  0x14   : > { %v250_v17 = vmax.f32 %v218_v9, 0.0  ;;  %611 = vmatmul.msk.f32.vlgmr.msra.gmra.mxu3 %vm275_vm1, %v266_v13  ;;  %v251_v25 = vmax.f32 %v219_v21, 0.0  ;;  %v260_v34 = vmax.f32 %v228_v30, 0.0  ;;  %v268_v35 = vmax.f32 %v236_v31, 0.0  ;;  %v177_v40 = vld [vmem:[%s685_s22 + $0x18] sm:$0xff]  ;;  %v178_v52 = vld [vmem:[%s685_s22 + $0x20] sm:$0xff] }
  0x15   : > { %587 = vmatmul.msk.f32.vlgmr.msra.gmra.mxu0 %vm275_vm1, %v242_v14  ;;  %v244_v36 = vmax.f32 %v212_v32, 0.0  ;;  %v252_v37 = vmax.f32 %v220_v33, 0.0  ;;  %v185_v41 = vld [vmem:[%s685_s22 + $0x58] sm:$0xff]  ;;  %v229_v42 = vadd.f32 %v677_v1, %v193_v38  ;;  %v237_v43 = vadd.f32 %v677_v1, %v201_v39  ;;  %v186_v53 = vld [vmem:[%s685_s22 + $0x60] sm:$0xff]  ;;  %v179_v0 = vld [vmem:[%s685_s22 + $0x28] sm:$0xff] }
  0x16   : > { %595 = vmatmul.msk.f32.vlgmr.msra.gmra.mxu1 %vm275_vm1, %v250_v17  ;;  %v213_v44 = vadd.f32 %v677_v1, %v177_v40  ;;  %v221_v45 = vadd.f32 %v677_v1, %v185_v41  ;;  %v230_v54 = vadd.f32 %v677_v1, %v194_v50  ;;  %v238_v55 = vadd.f32 %v677_v1, %v202_v51  ;;  %v187_v2 = vld [vmem:[%s685_s22 + $0x68] sm:$0xff]  ;;  %v196_v11 = vld [vmem:[%s685_s22 + $0xb0] sm:$0xff]  ;;  %v189_v26 = vld [vmem:[%s685_s22 + $0x78] sm:$0xff] }
  0x17   : > { %v261_v46 = vmax.f32 %v229_v42, 0.0  ;;  %v269_v47 = vmax.f32 %v237_v43, 0.0  ;;  %v214_v56 = vadd.f32 %v677_v1, %v178_v52  ;;  %v222_v57 = vadd.f32 %v677_v1, %v186_v53  ;;  %v204_v12 = vld [vmem:[%s685_s22 + $0xf0] sm:$0xff] }
  0x18   : > { %v245_v48 = vmax.f32 %v213_v44, 0.0  ;;  %v253_v49 = vmax.f32 %v221_v45, 0.0  ;;  %v262_v58 = vmax.f32 %v230_v54, 0.0  ;;  %v270_v59 = vmax.f32 %v238_v55, 0.0  ;;  %v180_v13 = vld [vmem:[%s685_s22 + $0x30] sm:$0xff] }
  0x19   : > { %v246_v60 = vmax.f32 %v214_v56, 0.0  ;;  %v254_v61 = vmax.f32 %v222_v57, 0.0  ;;  %v231_v3 = vadd.f32 %v677_v1, %v195_v62  ;;  %v239_v4 = vadd.f32 %v677_v1, %v203_v63  ;;  %v188_v14 = vld [vmem:[%s685_s22 + $0x70] sm:$0xff] }
  0x1a   : > { %v215_v5 = vadd.f32 %v677_v1, %v179_v0  ;;  %v223_v6 = vadd.f32 %v677_v1, %v187_v2  ;;  %v232_v15 = vadd.f32 %v677_v1, %v196_v11  ;;  %v240_v16 = vadd.f32 %v677_v1, %v204_v12 }
  0x1b   : > { %604 = vmatmul.msk.f32.gmra.mxu2 %vm275_vm1, %v259_v22  ;;  %v263_v7 = vmax.f32 %v231_v3, 0.0  ;;  %v271_v8 = vmax.f32 %v239_v4, 0.0  ;;  %v216_v17 = vadd.f32 %v677_v1, %v180_v13  ;;  %v224_v18 = vadd.f32 %v677_v1, %v188_v14 }
  0x1c   : > { %612 = vmatmul.msk.f32.gmra.mxu3 %vm275_vm1, %v267_v23  ;;  %v247_v9 = vmax.f32 %v215_v5, 0.0  ;;  %v255_v10 = vmax.f32 %v223_v6, 0.0  ;;  %v264_v19 = vmax.f32 %v232_v15, 0.0  ;;  %v272_v20 = vmax.f32 %v240_v16, 0.0  ;;  %v197_v23 = vld [vmem:[%s685_s22 + $0xb8] sm:$0xff] }
  0x1d   : > { %588 = vmatmul.msk.f32.gmra.mxu0 %vm275_vm1, %v243_v24  ;;  %v248_v21 = vmax.f32 %v216_v17, 0.0  ;;  %v256_v22 = vmax.f32 %v224_v18, 0.0  ;;  %v205_v24 = vld [vmem:[%s685_s22 + $0xf8] sm:$0xff]  ;;  %v233_v27 = vadd.f32 %v677_v1, %v197_v23  ;;  %v225_v30 = vadd.f32 %v677_v1, %v189_v26 }
  0x1e   : > { %596 = vmatmul.msk.f32.gmra.mxu1 %vm275_vm1, %v251_v25  ;;  %v181_v25 = vld [vmem:[%s685_s22 + $0x38] sm:$0xff]  ;;  %v241_v28 = vadd.f32 %v677_v1, %v205_v24 }
  0x1f   : > { %v217_v29 = vadd.f32 %v677_v1, %v181_v25  ;;  %v265_v31 = vmax.f32 %v233_v27, 0.0 }
  0x20   : > { %v273_v32 = vmax.f32 %v241_v28, 0.0 }
  0x21   : > { %v249_v33 = vmax.f32 %v217_v29, 0.0 }
  0x23   : > { %605 = vmatmul.msk.f32.gmra.mxu2 %vm275_vm1, %v260_v34  ;;  %v257_v34 = vmax.f32 %v225_v30, 0.0 }
  0x24   : > { %613 = vmatmul.msk.f32.gmra.mxu3 %vm275_vm1, %v268_v35 }
  0x25   : > { %589 = vmatmul.msk.f32.gmra.mxu0 %vm275_vm1, %v244_v36 }
  0x26   : > { %597 = vmatmul.msk.f32.gmra.mxu1 %vm275_vm1, %v252_v37 }
  0x2b   : > { %606 = vmatmul.msk.f32.gmra.mxu2 %vm275_vm1, %v261_v46 }
  0x2c   : > { %614 = vmatmul.msk.f32.gmra.mxu3 %vm275_vm1, %v269_v47 }
  0x2d   : > { %590 = vmatmul.msk.f32.gmra.mxu0 %vm275_vm1, %v245_v48 }
  0x2e   : > { %598 = vmatmul.msk.f32.gmra.mxu1 %vm275_vm1, %v253_v49 }
  0x33   : > { %607 = vmatmul.msk.f32.gmra.mxu2 %vm275_vm1, %v262_v58 }
  0x34   : > { %615 = vmatmul.msk.f32.gmra.mxu3 %vm275_vm1, %v270_v59 }
  0x35   : > { %591 = vmatmul.msk.f32.gmra.mxu0 %vm275_vm1, %v246_v60 }
  0x36   : > { %599 = vmatmul.msk.f32.gmra.mxu1 %vm275_vm1, %v254_v61 }
  0x3b   : > { %608 = vmatmul.msk.f32.gmra.mxu2 %vm275_vm1, %v263_v7 }
  0x3c   : > { %616 = vmatmul.msk.f32.gmra.mxu3 %vm275_vm1, %v271_v8 }
  0x3d   : > { %592 = vmatmul.msk.f32.gmra.mxu0 %vm275_vm1, %v247_v9 }
  0x3e   : > { %600 = vmatmul.msk.f32.gmra.mxu1 %vm275_vm1, %v255_v10 }
  0x43   : > { %609 = vmatmul.msk.f32.gmra.mxu2 %vm275_vm1, %v264_v19 }
  0x44   : > { %617 = vmatmul.msk.f32.gmra.mxu3 %vm275_vm1, %v272_v20 }
  0x45   : > { %593 = vmatmul.msk.f32.gmra.mxu0 %vm275_vm1, %v248_v21 }
  0x46   : > { %601 = vmatmul.msk.f32.gmra.mxu1 %vm275_vm1, %v256_v22 }
  0x4b   : > { %610 = vmatmul.msk.f32.gmra.mxu2 %vm275_vm1, %v265_v31 }
  0x4c   : > { %618 = vmatmul.msk.f32.gmra.mxu3 %vm275_vm1, %v273_v32 }
  0x4d   : > { %594 = vmatmul.msk.f32.gmra.mxu0 %vm275_vm1, %v249_v33 }
  0x4e   : > { %602 = vmatmul.msk.f32.gmra.mxu1 %vm275_vm1, %v257_v34 }
  0x92   : > { %v393_v1 = vpop.f32.mrf.mxu0 }
  0x93   : > { %v417_v35 = vpop.f32.mrf.mxu1  ;;  %489 = vst.msk [vmem:[%s788_s25] sm:$0xff] %vm275_vm1, %v393_v1 }
  0x94   : > { %497 = vst.msk [vmem:[%s788_s25 + $0x40] sm:$0xff] %vm275_vm1, %v417_v35 }
  0x96   : > { %v441_v36 = vpop.f32.mrf.mxu2 }
  0x97   : > { %v465_v37 = vpop.f32.mrf.mxu3  ;;  %505 = vst.msk [vmem:[%s788_s25 + $0x80] sm:$0xff] %vm275_vm1, %v441_v36 }
  0x98   : > { %513 = vst.msk [vmem:[%s788_s25 + $0xc0] sm:$0xff] %vm275_vm1, %v465_v37 }
  0x9a   : > { %v396_v38 = vpop.f32.mrf.mxu0 }
  0x9b   : > { %v420_v39 = vpop.f32.mrf.mxu1  ;;  %490 = vst.msk [vmem:[%s788_s25 + $0x8] sm:$0xff] %vm275_vm1, %v396_v38 }
  0x9c   : > { %498 = vst.msk [vmem:[%s788_s25 + $0x48] sm:$0xff] %vm275_vm1, %v420_v39 }
  0x9e   : > { %v444_v40 = vpop.f32.mrf.mxu2 }
  0x9f   : > { %v468_v41 = vpop.f32.mrf.mxu3  ;;  %506 = vst.msk [vmem:[%s788_s25 + $0x88] sm:$0xff] %vm275_vm1, %v444_v40 }
  0xa0   : > { %514 = vst.msk [vmem:[%s788_s25 + $0xc8] sm:$0xff] %vm275_vm1, %v468_v41 }
  0xa2   : > { %v399_v42 = vpop.f32.mrf.mxu0 }
  0xa3   : > { %v423_v43 = vpop.f32.mrf.mxu1  ;;  %491 = vst.msk [vmem:[%s788_s25 + $0x10] sm:$0xff] %vm275_vm1, %v399_v42 }
  0xa4   : > { %499 = vst.msk [vmem:[%s788_s25 + $0x50] sm:$0xff] %vm275_vm1, %v423_v43 }
  0xa6   : > { %v447_v44 = vpop.f32.mrf.mxu2 }
  0xa7   : > { %v471_v45 = vpop.f32.mrf.mxu3  ;;  %507 = vst.msk [vmem:[%s788_s25 + $0x90] sm:$0xff] %vm275_vm1, %v447_v44 }
  0xa8   : > { %515 = vst.msk [vmem:[%s788_s25 + $0xd0] sm:$0xff] %vm275_vm1, %v471_v45 }
  0xaa   : > { %v402_v46 = vpop.f32.mrf.mxu0 }
  0xab   : > { %v426_v47 = vpop.f32.mrf.mxu1  ;;  %492 = vst.msk [vmem:[%s788_s25 + $0x18] sm:$0xff] %vm275_vm1, %v402_v46 }
  0xac   : > { %500 = vst.msk [vmem:[%s788_s25 + $0x58] sm:$0xff] %vm275_vm1, %v426_v47 }
  0xae   : > { %v450_v48 = vpop.f32.mrf.mxu2 }
  0xaf   : > { %v474_v49 = vpop.f32.mrf.mxu3  ;;  %508 = vst.msk [vmem:[%s788_s25 + $0x98] sm:$0xff] %vm275_vm1, %v450_v48 }
  0xb0   : > { %516 = vst.msk [vmem:[%s788_s25 + $0xd8] sm:$0xff] %vm275_vm1, %v474_v49 }
  0xb2   : > { %v405_v50 = vpop.f32.mrf.mxu0 }
  0xb3   : > { %v429_v51 = vpop.f32.mrf.mxu1  ;;  %493 = vst.msk [vmem:[%s788_s25 + $0x20] sm:$0xff] %vm275_vm1, %v405_v50 }
  0xb4   : > { %501 = vst.msk [vmem:[%s788_s25 + $0x60] sm:$0xff] %vm275_vm1, %v429_v51 }
  0xb6   : > { %v453_v52 = vpop.f32.mrf.mxu2 }
  0xb7   : > { %v477_v53 = vpop.f32.mrf.mxu3  ;;  %509 = vst.msk [vmem:[%s788_s25 + $0xa0] sm:$0xff] %vm275_vm1, %v453_v52 }
  0xb8   : > { %517 = vst.msk [vmem:[%s788_s25 + $0xe0] sm:$0xff] %vm275_vm1, %v477_v53 }
  0xba   : > { %v408_v54 = vpop.f32.mrf.mxu0 }
  0xbb   : > { %v432_v55 = vpop.f32.mrf.mxu1  ;;  %494 = vst.msk [vmem:[%s788_s25 + $0x28] sm:$0xff] %vm275_vm1, %v408_v54 }
  0xbc   : > { %502 = vst.msk [vmem:[%s788_s25 + $0x68] sm:$0xff] %vm275_vm1, %v432_v55 }
  0xbe   : > { %v456_v56 = vpop.f32.mrf.mxu2 }
  0xbf   : > { %v480_v57 = vpop.f32.mrf.mxu3  ;;  %510 = vst.msk [vmem:[%s788_s25 + $0xa8] sm:$0xff] %vm275_vm1, %v456_v56 }
  0xc0   : > { %518 = vst.msk [vmem:[%s788_s25 + $0xe8] sm:$0xff] %vm275_vm1, %v480_v57 }
  0xc2   : > { %v411_v58 = vpop.f32.mrf.mxu0 }
  0xc3   : > { %v435_v59 = vpop.f32.mrf.mxu1  ;;  %495 = vst.msk [vmem:[%s788_s25 + $0x30] sm:$0xff] %vm275_vm1, %v411_v58 }
  0xc4   : > { %503 = vst.msk [vmem:[%s788_s25 + $0x70] sm:$0xff] %vm275_vm1, %v435_v59 }
  0xc6   : > { %v459_v60 = vpop.f32.mrf.mxu2 }
  0xc7   : > { %v483_v61 = vpop.f32.mrf.mxu3  ;;  %511 = vst.msk [vmem:[%s788_s25 + $0xb0] sm:$0xff] %vm275_vm1, %v459_v60 }
  0xc8   : > { %519 = vst.msk [vmem:[%s788_s25 + $0xf0] sm:$0xff] %vm275_vm1, %v483_v61 }
  0xca   : > { %v414_v62 = vpop.f32.mrf.mxu0 }
  0xcb   : > { %v438_v63 = vpop.f32.mrf.mxu1  ;;  %496 = vst.msk [vmem:[%s788_s25 + $0x38] sm:$0xff] %vm275_vm1, %v414_v62 }
  0xcc   : > { %504 = vst.msk [vmem:[%s788_s25 + $0x78] sm:$0xff] %vm275_vm1, %v438_v63 }
  0xce   : > { %v462_v0 = vpop.f32.mrf.mxu2 }
  0xcf   : > { %v486_v2 = vpop.f32.mrf.mxu3  ;;  %512 = vst.msk [vmem:[%s788_s25 + $0xb8] sm:$0xff] %vm275_vm1, %v462_v0 }
  0xd0   : > { %520 = vst.msk [vmem:[%s788_s25 + $0xf8] sm:$0xff] %vm275_vm1, %v486_v2 }
  0xd1 PF: > { %s13_s12 = sadd.s32 1, %s639_s12  }
  0xd2   : > { %p10_p4 = scmp.ge.s32.totalorder %s13_s12, 10  }
  0xd4   :  { %12 = sbr.rel (!%p10_p4) target bundleno = 1 (0x1), region = 62 }

</bundles_post_ra>
